<compile_context>
chip_gen: v7x
topology: tpu7x:2x2x1
jax: 0.10.0
libtpu: 0.0.40
codegen_flags: <defaults>
</compile_context>

<pallas_src>
import functools

import jax
import jax.numpy as jnp
from jax.experimental import pallas as pl
from jax.experimental.pallas import tpu as pltpu

H1 = 16          # hidden size of lstm / attention / lstm_cell
H2 = 6           # hidden size of lstm_2 and of the final Linear
D_IN = 6         # model input feature dim
G1 = 4 * H1      # 64 : fused gate width of LSTM-1 / att LSTMCell
G2 = 4 * H2      # 24 : fused gate width of LSTM-2

# ---------------- packed weight-slab layout (every segment starts on an 8-row boundary) ----------------
LANES = G1       # 64 lanes; narrower matrices are zero-padded on the lane axis
R_W1IH = 0       # (6,  64)  LSTM-1 W_ih^T, gate cols [i|f|g|o]
R_W1HH = 8       # (16, 64)  LSTM-1 W_hh^T
R_B1   = 24      # (1,  64)  LSTM-1 b_ih + b_hh
R_WC   = 32      # (32, 64)  att LSTMCell [W_ih^T ; W_hh^T]
R_BC   = 64      # (1,  64)  att LSTMCell b_ih + b_hh
R_WE   = 72      # (32, 16)  att W_e.weight^T  (rows ordered [h | c])
R_WB   = 104     # (16, 16)  att W_b.weight^T
R_VB   = 120     # (1,  16)  att v_b
R_BE   = 128     # (1,  16)  att W_e.bias
R_BB   = 136     # (1,  16)  att W_b.bias
R_W2IH = 144     # (16, 24)  LSTM-2 W_ih^T
R_W2HH = 160     # (6,  24)  LSTM-2 W_hh^T
R_B2   = 168     # (1,  24)  LSTM-2 b_ih + b_hh
R_LRW  = 176     # (6,  6)   lr.weight^T
R_LRB  = 184     # (1,  6)   lr.bias
SLAB_ROWS = 192


# ----------------------------- fused Pallas kernel -----------------------------

def _fused_forward_kernel(x_ref, w_ref, out_ref, out1_scr, pre2_scr, *, B, T):
    """x_ref: (T*B, D_IN) time-major (row = t*B + b); w_ref: (SLAB_ROWS, LANES) packed weights."""
    f32 = jnp.float32

    def dot(a, b):
        return jnp.dot(a, b, preferred_element_type=jnp.float32)

    def sig(z):
        # exact sigmoid, divide-free (tanh goes to the EUP)
        return 0.5 * (jnp.tanh(0.5 * z) + 1.0)

    # ================= LSTM-1 (6 -> 16), serial over time =================
    # Fused, hoisted input projection: ONE dot for all gates / steps / batch rows.
    pre1 = dot(x_ref[...], w_ref[R_W1IH:R_W1IH + D_IN, :]) + w_ref[R_B1:R_B1 + 1, :]   # (T*B, 64)
    w1hh = w_ref[R_W1HH:R_W1HH + H1, :]                                                # (16, 64)

    h = jnp.zeros((B, H1), f32)
    c = jnp.zeros((B, H1), f32)
    for t in range(T):
        g = pre1[t * B:(t + 1) * B, :] + dot(h, w1hh)          # ONE fused gate dot / step
        gi = sig(g[:, 0:H1])
        gf = sig(g[:, H1:2 * H1])
        gg = jnp.tanh(g[:, 2 * H1:3 * H1])
        go = sig(g[:, 3 * H1:4 * H1])
        c = gf * c + gi * gg
        h = go * jnp.tanh(c)
        out1_scr[t * B:(t + 1) * B, :] = jnp.maximum(h, 0.0)   # ReLU fused with the staging store

    # Per-batch sequences gathered once via strided reads (off the serial chains).
    xs = [out1_scr[pl.ds(i, T, stride=B), :] for i in range(B)]   # each (T, 16)
    xs_all = jnp.concatenate(xs, axis=0)                          # (B*T, 16), batch-major

    # ================= att (serial over batch rows; state is (T, 16)) =================
    # Fused, hoisted W_b projection for all batch rows: ONE dot.
    bproj = dot(xs_all, w_ref[R_WB:R_WB + H1, 0:H1]) + w_ref[R_BB:R_BB + 1, 0:H1]      # (B*T, 16)

    weT = w_ref[R_WE:R_WE + 2 * H1, 0:H1]      # (32, 16)
    be  = w_ref[R_BE:R_BE + 1, 0:H1]           # (1, 16)
    vb  = w_ref[R_VB:R_VB + 1, 0:H1]           # (1, 16)
    wc  = w_ref[R_WC:R_WC + 2 * H1, :]         # (32, 64)  fused [W_ih^T ; W_hh^T]
    bc  = w_ref[R_BC:R_BC + 1, :]              # (1, 64)

    ha = jnp.zeros((T, H1), f32)
    ca = jnp.zeros((T, H1), f32)
    att_h = []
    for i in range(B):
        hc = jnp.concatenate([ha, ca], axis=1)                         # (T, 32)
        s = jnp.tanh(dot(hc, weT) + be + bproj[i * T:(i + 1) * T, :])  # ONE dot for W_e([h,c])
        logits = jnp.sum(s * vb, axis=-1, keepdims=True)               # (T, 1)
        m = jnp.max(logits, axis=0, keepdims=True)                     # softmax over dim 0
        e = jnp.exp(logits - m)
        attw = e / jnp.sum(e, axis=0, keepdims=True)
        winp = attw * xs[i]                                            # (T, 16)
        g = dot(jnp.concatenate([winp, ha], axis=1), wc) + bc          # ONE fused cell dot / step
        gi = sig(g[:, 0:H1])
        gf = sig(g[:, H1:2 * H1])
        gg = jnp.tanh(g[:, 2 * H1:3 * H1])
        go = sig(g[:, 3 * H1:4 * H1])
        ca = gf * ca + gi * gg
        ha = go * jnp.tanh(ca)
        att_h.append(ha)

    # ================= LSTM-2 (16 -> 6), serial over time =================
    # Fused, hoisted input projection (ONE dot), staged batch-major in VMEM so the time
    # loop reads small strided slices instead of doing per-step 1-row concatenates.
    pre2_scr[...] = (dot(jnp.concatenate(att_h, axis=0), w_ref[R_W2IH:R_W2IH + H1, 0:G2])
                     + w_ref[R_B2:R_B2 + 1, 0:G2])                     # (B*T, 24), row = i*T + t
    w2hh = w_ref[R_W2HH:R_W2HH + H2, 0:G2]                             # (6, 24)

    h2 = jnp.zeros((B, H2), f32)
    c2 = jnp.zeros((B, H2), f32)
    for t in range(T):
        g = pre2_scr[pl.ds(t, B, stride=T), :] + dot(h2, w2hh)         # (B, 24)
        gi = sig(g[:, 0:H2])
        gf = sig(g[:, H2:2 * H2])
        gg = jnp.tanh(g[:, 2 * H2:3 * H2])
        go = sig(g[:, 3 * H2:4 * H2])
        c2 = gf * c2 + gi * gg
        h2 = go * jnp.tanh(c2)

    # ================= head: ReLU -> Linear(6,6) -> sigmoid (last step only) =================
    y = sig(dot(jnp.maximum(h2, 0.0), w_ref[R_LRW:R_LRW + H2, 0:H2])
            + w_ref[R_LRB:R_LRB + 1, 0:H2])
    out_ref[...] = y


# ----------------------------- wrapper -----------------------------

def pack_params(p):
    """Pack all weights/biases into one (SLAB_ROWS, 64) f32 slab.  Call ONCE, outside the
    per-call forward path (keeps the per-call wrapper to a single transpose+reshape of x)."""
    segs = [
        (R_W1IH, p["l1_wih"].T),
        (R_W1HH, p["l1_whh"].T),
        (R_B1,   (p["l1_bih"] + p["l1_bhh"])[None, :]),
        (R_WC,   jnp.concatenate([p["c_wih"].T, p["c_whh"].T], axis=0)),
        (R_BC,   (p["c_bih"] + p["c_bhh"])[None, :]),
        (R_WE,   p["we_w"].T),
        (R_WB,   p["wb_w"].T),
        (R_VB,   p["vb"]),
        (R_BE,   p["we_b"][None, :]),
        (R_BB,   p["wb_b"][None, :]),
        (R_W2IH, p["l2_wih"].T),
        (R_W2HH, p["l2_whh"].T),
        (R_B2,   (p["l2_bih"] + p["l2_bhh"])[None, :]),
        (R_LRW,  p["lr_w"].T),
        (R_LRB,  p["lr_b"][None, :]),
    ]
    slab = jnp.zeros((SLAB_ROWS, LANES), jnp.float32)
    for r, a in segs:
        a = jnp.asarray(a, jnp.float32)
        a = jnp.pad(a, ((0, 0), (0, LANES - a.shape[1])))
        slab = slab.at[r:r + a.shape[0], :].set(a)
    return slab


def forward_pallas(x, w_slab):
    """x: (B, T, 6) float32 (PyTorch batch_first layout) -> (B, 6)."""
    B, T, _ = x.shape
    # time-major flatten of the tiny input once, outside the kernel (row = t*B + b)
    x_flat = jnp.transpose(x, (1, 0, 2)).reshape(T * B, D_IN)
    kernel = functools.partial(_fused_forward_kernel, B=B, T=T)
    return pl.pallas_call(
        kernel,
        out_shape=jax.ShapeDtypeStruct((B, H2), jnp.float32),
        in_specs=[pl.BlockSpec(memory_space=pltpu.MemorySpace.VMEM),
                  pl.BlockSpec(memory_space=pltpu.MemorySpace.VMEM)],
        out_specs=pl.BlockSpec(memory_space=pltpu.MemorySpace.VMEM),
        scratch_shapes=[pltpu.VMEM((T * B, H1), jnp.float32),   # relu(LSTM-1 out), time-major
                        pltpu.VMEM((B * T, G2), jnp.float32)],  # LSTM-2 input proj, batch-major
    )(x_flat, w_slab)
    # TODO(synk): for many independent sequences, add a leading "parallel" grid axis over
    # sequences (shards across v7x's 2 TensorCores and amortizes launch/DMA overhead).


# ----------------------------- pure-JAX reference -----------------------------

def _sigmoid_ref(z):
    return 1.0 / (1.0 + jnp.exp(-z))


def _lstm_ref(x, w_ih, w_hh, b_ih, b_hh):
    B, T, _ = x.shape
    H = w_hh.shape[1]
    h = jnp.zeros((B, H), jnp.float32)
    c = jnp.zeros((B, H), jnp.float32)
    outs = []
    for t in range(T):
        g = x[:, t, :] @ w_ih.T + b_ih + h @ w_hh.T + b_hh
        i = _sigmoid_ref(g[:, :H]); f = _sigmoid_ref(g[:, H:2 * H])
        gg = jnp.tanh(g[:, 2 * H:3 * H]); o = _sigmoid_ref(g[:, 3 * H:])
        c = f * c + i * gg
        h = o * jnp.tanh(c)
        outs.append(h)
    return jnp.stack(outs, axis=1)


def _att_ref(x, p):
    B, T, H = x.shape
    h = jnp.zeros((T, H), jnp.float32)
    c = jnp.zeros((T, H), jnp.float32)
    outs = []
    for i in range(B):
        xi = x[i]
        htct = jnp.concatenate([h, c], axis=1)
        a = htct @ p["we_w"].T + p["we_b"]
        b = xi @ p["wb_w"].T + p["wb_b"]
        logits = jnp.tanh(a + b) @ p["vb"].T
        m = jnp.max(logits, axis=0, keepdims=True)
        e = jnp.exp(logits - m)
        w = e / jnp.sum(e, axis=0, keepdims=True)
        winp = w * xi
        g = winp @ p["c_wih"].T + p["c_bih"] + h @ p["c_whh"].T + p["c_bhh"]
        ii = _sigmoid_ref(g[:, :H]); f = _sigmoid_ref(g[:, H:2 * H])
        gg = jnp.tanh(g[:, 2 * H:3 * H]); o = _sigmoid_ref(g[:, 3 * H:])
        c = f * c + ii * gg
        h = o * jnp.tanh(c)
        outs.append(h)
    return jnp.stack(outs, axis=0)


def forward_ref(x, p):
    out1 = _lstm_ref(x, p["l1_wih"], p["l1_whh"], p["l1_bih"], p["l1_bhh"])
    out1 = jnp.maximum(out1, 0.0)
    att_out = _att_ref(out1, p)
    out2 = _lstm_ref(att_out, p["l2_wih"], p["l2_whh"], p["l2_bih"], p["l2_bhh"])
    out2 = jnp.maximum(out2, 0.0)
    y = out2 @ p["lr_w"].T + p["lr_b"]
    y = _sigmoid_ref(y)
    return y[:, -1, :]


# ----------------------------- parameter init -----------------------------

def init_params(key):
    ks = jax.random.split(key, 18)
    s = 0.3

    def rn(k, shape):
        return jax.random.normal(k, shape, jnp.float32) * s

    p = {
        # nn.LSTM(6, 16, 1)
        "l1_wih": rn(ks[0], (4 * H1, D_IN)), "l1_whh": rn(ks[1], (4 * H1, H1)),
        "l1_bih": rn(ks[2], (4 * H1,)),      "l1_bhh": rn(ks[3], (4 * H1,)),
        # nn.LSTM(16, 6, 1)
        "l2_wih": rn(ks[4], (4 * H2, H1)),   "l2_whh": rn(ks[5], (4 * H2, H2)),
        "l2_bih": rn(ks[6], (4 * H2,)),      "l2_bhh": rn(ks[7], (4 * H2,)),
        # AttentionLayer
        "wb_w": rn(ks[8], (H1, H1)),  "wb_b": rn(ks[9], (H1,)),
        "we_w": rn(ks[10], (H1, 2 * H1)), "we_b": rn(ks[11], (H1,)),
        "vb": rn(ks[12], (1, H1)),
        # nn.LSTMCell(16, 16)
        "c_wih": rn(ks[13], (4 * H1, H1)), "c_whh": rn(ks[14], (4 * H1, H1)),
        "c_bih": rn(ks[15], (4 * H1,)),    "c_bhh": rn(ks[16], (4 * H1,)),
        # nn.Linear(6, 6)
        "lr_w": rn(ks[17], (H2, H2)),
        "lr_b": jnp.linspace(-0.1, 0.1, H2, dtype=jnp.float32),
    }
    return p


if __name__ == "__main__":
    key = jax.random.PRNGKey(0)
    kx, kp = jax.random.split(key)
    B, T = 2, 8
    x = jax.random.normal(kx, (B, T, D_IN), jnp.float32)
    params = init_params(kp)

    w_slab = pack_params(params)          # one-time packing, outside the jitted forward
    y = jax.jit(forward_pallas)(x, w_slab)
    y = jax.block_until_ready(y)

    y_ref = forward_ref(x, params)
    assert y.shape == (B, H2), y.shape
    err = float(jnp.max(jnp.abs(y - y_ref)))
    assert err < 1e-3, f"Pallas vs reference mismatch: max abs err = {err}"
    print("KERNEL_OK")
</pallas_src>

<mosaic_0001>
module attributes {stable_mosaic.version = 11 : i64} {
  func.func @_fused_forward_kernel(%arg0: memref<16x6xf32, #tpu.memory_space<vmem>>, %arg1: memref<192x64xf32, #tpu.memory_space<vmem>>, %arg2: memref<2x6xf32, #tpu.memory_space<vmem>>, %arg3: memref<16x16xf32, #tpu.memory_space<vmem>>, %arg4: memref<16x24xf32, #tpu.memory_space<vmem>>) attributes {dimension_semantics = [], scalar_prefetch = 0 : i64, scratch_operands = 2 : i64, tpu.core_type = #tpu.core_type<tc>} {
    %c0 = arith.constant 0 : index
    %c0_0 = arith.constant 0 : index
    %0 = vector.load %arg0[%c0, %c0_0] : memref<16x6xf32, #tpu.memory_space<vmem>>, vector<16x6xf32>
    %c0_1 = arith.constant 0 : index
    %c0_2 = arith.constant 0 : index
    %1 = vector.load %arg1[%c0_1, %c0_2] : memref<192x64xf32, #tpu.memory_space<vmem>>, vector<6x64xf32>
    %cst = arith.constant dense<0.000000e+00> : vector<16x64xf32>
    %2 = tpu.matmul %0, %1, %cst {dimension_numbers = #tpu.dot_dimension_numbers<[1], [0], [0], [1], [0, 0, 1, 1], [], []>} : vector<16x6xf32>, vector<6x64xf32>, vector<16x64xf32> -> vector<16x64xf32>
    %c24 = arith.constant 24 : index
    %c0_3 = arith.constant 0 : index
    %3 = vector.load %arg1[%c24, %c0_3] : memref<192x64xf32, #tpu.memory_space<vmem>>, vector<1x64xf32>
    %4 = vector.broadcast %3 : vector<1x64xf32> to vector<16x64xf32>
    %5 = arith.addf %2, %4 : vector<16x64xf32>
    %c8 = arith.constant 8 : index
    %c0_4 = arith.constant 0 : index
    %6 = vector.load %arg1[%c8, %c0_4] : memref<192x64xf32, #tpu.memory_space<vmem>>, vector<16x64xf32>
    %cst_5 = arith.constant 0.000000e+00 : f32
    %7 = vector.broadcast %cst_5 : f32 to vector<2x16xf32>
    %cst_6 = arith.constant 0.000000e+00 : f32
    %8 = vector.broadcast %cst_6 : f32 to vector<2x16xf32>
    %9 = vector.extract_strided_slice %5 {offsets = [0, 0], sizes = [2, 64], strides = [1, 1]} : vector<16x64xf32> to vector<2x64xf32>
    %cst_7 = arith.constant dense<0.000000e+00> : vector<2x64xf32>
    %10 = tpu.matmul %7, %6, %cst_7 {dimension_numbers = #tpu.dot_dimension_numbers<[1], [0], [0], [1], [0, 0, 1, 1], [], []>} : vector<2x16xf32>, vector<16x64xf32>, vector<2x64xf32> -> vector<2x64xf32>
    %11 = arith.addf %9, %10 : vector<2x64xf32>
    %12 = vector.extract_strided_slice %11 {offsets = [0, 0], sizes = [2, 16], strides = [1, 1]} : vector<2x64xf32> to vector<2x16xf32>
    %cst_8 = arith.constant 5.000000e-01 : f32
    %13 = vector.broadcast %cst_8 : f32 to vector<2x16xf32>
    %14 = arith.mulf %13, %12 : vector<2x16xf32>
    %15 = math.tanh %14 : vector<2x16xf32>
    %cst_9 = arith.constant 1.000000e+00 : f32
    %16 = vector.broadcast %cst_9 : f32 to vector<2x16xf32>
    %17 = arith.addf %15, %16 : vector<2x16xf32>
    %cst_10 = arith.constant 5.000000e-01 : f32
    %18 = vector.broadcast %cst_10 : f32 to vector<2x16xf32>
    %19 = arith.mulf %18, %17 : vector<2x16xf32>
    %20 = vector.extract_strided_slice %11 {offsets = [0, 16], sizes = [2, 16], strides = [1, 1]} : vector<2x64xf32> to vector<2x16xf32>
    %cst_11 = arith.constant 5.000000e-01 : f32
    %21 = vector.broadcast %cst_11 : f32 to vector<2x16xf32>
    %22 = arith.mulf %21, %20 : vector<2x16xf32>
    %23 = math.tanh %22 : vector<2x16xf32>
    %cst_12 = arith.constant 1.000000e+00 : f32
    %24 = vector.broadcast %cst_12 : f32 to vector<2x16xf32>
    %25 = arith.addf %23, %24 : vector<2x16xf32>
    %cst_13 = arith.constant 5.000000e-01 : f32
    %26 = vector.broadcast %cst_13 : f32 to vector<2x16xf32>
    %27 = arith.mulf %26, %25 : vector<2x16xf32>
    %28 = vector.extract_strided_slice %11 {offsets = [0, 32], sizes = [2, 16], strides = [1, 1]} : vector<2x64xf32> to vector<2x16xf32>
    %29 = math.tanh %28 : vector<2x16xf32>
    %30 = vector.extract_strided_slice %11 {offsets = [0, 48], sizes = [2, 16], strides = [1, 1]} : vector<2x64xf32> to vector<2x16xf32>
    %cst_14 = arith.constant 5.000000e-01 : f32
    %31 = vector.broadcast %cst_14 : f32 to vector<2x16xf32>
    %32 = arith.mulf %31, %30 : vector<2x16xf32>
    %33 = math.tanh %32 : vector<2x16xf32>
    %cst_15 = arith.constant 1.000000e+00 : f32
    %34 = vector.broadcast %cst_15 : f32 to vector<2x16xf32>
    %35 = arith.addf %33, %34 : vector<2x16xf32>
    %cst_16 = arith.constant 5.000000e-01 : f32
    %36 = vector.broadcast %cst_16 : f32 to vector<2x16xf32>
    %37 = arith.mulf %36, %35 : vector<2x16xf32>
    %38 = arith.mulf %27, %8 : vector<2x16xf32>
    %39 = arith.mulf %19, %29 : vector<2x16xf32>
    %40 = arith.addf %38, %39 : vector<2x16xf32>
    %41 = math.tanh %40 : vector<2x16xf32>
    %42 = arith.mulf %37, %41 : vector<2x16xf32>
    %cst_17 = arith.constant 0.000000e+00 : f32
    %43 = vector.broadcast %cst_17 : f32 to vector<2x16xf32>
    %44 = arith.maximumf %42, %43 : vector<2x16xf32>
    %c0_18 = arith.constant 0 : index
    %c0_19 = arith.constant 0 : index
    %45 = vector.load %arg3[%c0_18, %c0_19] : memref<16x16xf32, #tpu.memory_space<vmem>>, vector<2x16xf32>
    tpu.vector_store %arg3[%c0_18, %c0_19], %44 {strides = array<i32>} : memref<16x16xf32, #tpu.memory_space<vmem>>, vector<2x16xf32>,
    %46 = vector.extract_strided_slice %5 {offsets = [2, 0], sizes = [2, 64], strides = [1, 1]} : vector<16x64xf32> to vector<2x64xf32>
    %cst_20 = arith.constant dense<0.000000e+00> : vector<2x64xf32>
    %47 = tpu.matmul %42, %6, %cst_20 {dimension_numbers = #tpu.dot_dimension_numbers<[1], [0], [0], [1], [0, 0, 1, 1], [], []>} : vector<2x16xf32>, vector<16x64xf32>, vector<2x64xf32> -> vector<2x64xf32>
    %48 = arith.addf %46, %47 : vector<2x64xf32>
    %49 = vector.extract_strided_slice %48 {offsets = [0, 0], sizes = [2, 16], strides = [1, 1]} : vector<2x64xf32> to vector<2x16xf32>
    %cst_21 = arith.constant 5.000000e-01 : f32
    %50 = vector.broadcast %cst_21 : f32 to vector<2x16xf32>
    %51 = arith.mulf %50, %49 : vector<2x16xf32>
    %52 = math.tanh %51 : vector<2x16xf32>
    %cst_22 = arith.constant 1.000000e+00 : f32
    %53 = vector.broadcast %cst_22 : f32 to vector<2x16xf32>
    %54 = arith.addf %52, %53 : vector<2x16xf32>
    %cst_23 = arith.constant 5.000000e-01 : f32
    %55 = vector.broadcast %cst_23 : f32 to vector<2x16xf32>
    %56 = arith.mulf %55, %54 : vector<2x16xf32>
    %57 = vector.extract_strided_slice %48 {offsets = [0, 16], sizes = [2, 16], strides = [1, 1]} : vector<2x64xf32> to vector<2x16xf32>
    %cst_24 = arith.constant 5.000000e-01 : f32
    %58 = vector.broadcast %cst_24 : f32 to vector<2x16xf32>
    %59 = arith.mulf %58, %57 : vector<2x16xf32>
    %60 = math.tanh %59 : vector<2x16xf32>
    %cst_25 = arith.constant 1.000000e+00 : f32
    %61 = vector.broadcast %cst_25 : f32 to vector<2x16xf32>
    %62 = arith.addf %60, %61 : vector<2x16xf32>
    %cst_26 = arith.constant 5.000000e-01 : f32
    %63 = vector.broadcast %cst_26 : f32 to vector<2x16xf32>
    %64 = arith.mulf %63, %62 : vector<2x16xf32>
    %65 = vector.extract_strided_slice %48 {offsets = [0, 32], sizes = [2, 16], strides = [1, 1]} : vector<2x64xf32> to vector<2x16xf32>
    %66 = math.tanh %65 : vector<2x16xf32>
    %67 = vector.extract_strided_slice %48 {offsets = [0, 48], sizes = [2, 16], strides = [1, 1]} : vector<2x64xf32> to vector<2x16xf32>
    %cst_27 = arith.constant 5.000000e-01 : f32
    %68 = vector.broadcast %cst_27 : f32 to vector<2x16xf32>
    %69 = arith.mulf %68, %67 : vector<2x16xf32>
    %70 = math.tanh %69 : vector<2x16xf32>
    %cst_28 = arith.constant 1.000000e+00 : f32
    %71 = vector.broadcast %cst_28 : f32 to vector<2x16xf32>
    %72 = arith.addf %70, %71 : vector<2x16xf32>
    %cst_29 = arith.constant 5.000000e-01 : f32
    %73 = vector.broadcast %cst_29 : f32 to vector<2x16xf32>
    %74 = arith.mulf %73, %72 : vector<2x16xf32>
    %75 = arith.mulf %64, %40 : vector<2x16xf32>
    %76 = arith.mulf %56, %66 : vector<2x16xf32>
    %77 = arith.addf %75, %76 : vector<2x16xf32>
    %78 = math.tanh %77 : vector<2x16xf32>
    %79 = arith.mulf %74, %78 : vector<2x16xf32>
    %cst_30 = arith.constant 0.000000e+00 : f32
    %80 = vector.broadcast %cst_30 : f32 to vector<2x16xf32>
    %81 = arith.maximumf %79, %80 : vector<2x16xf32>
    %c2 = arith.constant 2 : index
    %c0_31 = arith.constant 0 : index
    %82 = vector.load %arg3[%c2, %c0_31] : memref<16x16xf32, #tpu.memory_space<vmem>>, vector<2x16xf32>
    tpu.vector_store %arg3[%c2, %c0_31], %81 {strides = array<i32>} : memref<16x16xf32, #tpu.memory_space<vmem>>, vector<2x16xf32>,
    %83 = vector.extract_strided_slice %5 {offsets = [4, 0], sizes = [2, 64], strides = [1, 1]} : vector<16x64xf32> to vector<2x64xf32>
    %cst_32 = arith.constant dense<0.000000e+00> : vector<2x64xf32>
    %84 = tpu.matmul %79, %6, %cst_32 {dimension_numbers = #tpu.dot_dimension_numbers<[1], [0], [0], [1], [0, 0, 1, 1], [], []>} : vector<2x16xf32>, vector<16x64xf32>, vector<2x64xf32> -> vector<2x64xf32>
    %85 = arith.addf %83, %84 : vector<2x64xf32>
    %86 = vector.extract_strided_slice %85 {offsets = [0, 0], sizes = [2, 16], strides = [1, 1]} : vector<2x64xf32> to vector<2x16xf32>
    %cst_33 = arith.constant 5.000000e-01 : f32
    %87 = vector.broadcast %cst_33 : f32 to vector<2x16xf32>
    %88 = arith.mulf %87, %86 : vector<2x16xf32>
    %89 = math.tanh %88 : vector<2x16xf32>
    %cst_34 = arith.constant 1.000000e+00 : f32
    %90 = vector.broadcast %cst_34 : f32 to vector<2x16xf32>
    %91 = arith.addf %89, %90 : vector<2x16xf32>
    %cst_35 = arith.constant 5.000000e-01 : f32
    %92 = vector.broadcast %cst_35 : f32 to vector<2x16xf32>
    %93 = arith.mulf %92, %91 : vector<2x16xf32>
    %94 = vector.extract_strided_slice %85 {offsets = [0, 16], sizes = [2, 16], strides = [1, 1]} : vector<2x64xf32> to vector<2x16xf32>
    %cst_36 = arith.constant 5.000000e-01 : f32
    %95 = vector.broadcast %cst_36 : f32 to vector<2x16xf32>
    %96 = arith.mulf %95, %94 : vector<2x16xf32>
    %97 = math.tanh %96 : vector<2x16xf32>
    %cst_37 = arith.constant 1.000000e+00 : f32
    %98 = vector.broadcast %cst_37 : f32 to vector<2x16xf32>
    %99 = arith.addf %97, %98 : vector<2x16xf32>
    %cst_38 = arith.constant 5.000000e-01 : f32
    %100 = vector.broadcast %cst_38 : f32 to vector<2x16xf32>
    %101 = arith.mulf %100, %99 : vector<2x16xf32>
    %102 = vector.extract_strided_slice %85 {offsets = [0, 32], sizes = [2, 16], strides = [1, 1]} : vector<2x64xf32> to vector<2x16xf32>
    %103 = math.tanh %102 : vector<2x16xf32>
    %104 = vector.extract_strided_slice %85 {offsets = [0, 48], sizes = [2, 16], strides = [1, 1]} : vector<2x64xf32> to vector<2x16xf32>
    %cst_39 = arith.constant 5.000000e-01 : f32
    %105 = vector.broadcast %cst_39 : f32 to vector<2x16xf32>
    %106 = arith.mulf %105, %104 : vector<2x16xf32>
    %107 = math.tanh %106 : vector<2x16xf32>
    %cst_40 = arith.constant 1.000000e+00 : f32
    %108 = vector.broadcast %cst_40 : f32 to vector<2x16xf32>
    %109 = arith.addf %107, %108 : vector<2x16xf32>
    %cst_41 = arith.constant 5.000000e-01 : f32
    %110 = vector.broadcast %cst_41 : f32 to vector<2x16xf32>
    %111 = arith.mulf %110, %109 : vector<2x16xf32>
    %112 = arith.mulf %101, %77 : vector<2x16xf32>
    %113 = arith.mulf %93, %103 : vector<2x16xf32>
    %114 = arith.addf %112, %113 : vector<2x16xf32>
    %115 = math.tanh %114 : vector<2x16xf32>
    %116 = arith.mulf %111, %115 : vector<2x16xf32>
    %cst_42 = arith.constant 0.000000e+00 : f32
    %117 = vector.broadcast %cst_42 : f32 to vector<2x16xf32>
    %118 = arith.maximumf %116, %117 : vector<2x16xf32>
    %c4 = arith.constant 4 : index
    %c0_43 = arith.constant 0 : index
    %119 = vector.load %arg3[%c4, %c0_43] : memref<16x16xf32, #tpu.memory_space<vmem>>, vector<2x16xf32>
    tpu.vector_store %arg3[%c4, %c0_43], %118 {strides = array<i32>} : memref<16x16xf32, #tpu.memory_space<vmem>>, vector<2x16xf32>,
    %120 = vector.extract_strided_slice %5 {offsets = [6, 0], sizes = [2, 64], strides = [1, 1]} : vector<16x64xf32> to vector<2x64xf32>
    %cst_44 = arith.constant dense<0.000000e+00> : vector<2x64xf32>
    %121 = tpu.matmul %116, %6, %cst_44 {dimension_numbers = #tpu.dot_dimension_numbers<[1], [0], [0], [1], [0, 0, 1, 1], [], []>} : vector<2x16xf32>, vector<16x64xf32>, vector<2x64xf32> -> vector<2x64xf32>
    %122 = arith.addf %120, %121 : vector<2x64xf32>
    %123 = vector.extract_strided_slice %122 {offsets = [0, 0], sizes = [2, 16], strides = [1, 1]} : vector<2x64xf32> to vector<2x16xf32>
    %cst_45 = arith.constant 5.000000e-01 : f32
    %124 = vector.broadcast %cst_45 : f32 to vector<2x16xf32>
    %125 = arith.mulf %124, %123 : vector<2x16xf32>
    %126 = math.tanh %125 : vector<2x16xf32>
    %cst_46 = arith.constant 1.000000e+00 : f32
    %127 = vector.broadcast %cst_46 : f32 to vector<2x16xf32>
    %128 = arith.addf %126, %127 : vector<2x16xf32>
    %cst_47 = arith.constant 5.000000e-01 : f32
    %129 = vector.broadcast %cst_47 : f32 to vector<2x16xf32>
    %130 = arith.mulf %129, %128 : vector<2x16xf32>
    %131 = vector.extract_strided_slice %122 {offsets = [0, 16], sizes = [2, 16], strides = [1, 1]} : vector<2x64xf32> to vector<2x16xf32>
    %cst_48 = arith.constant 5.000000e-01 : f32
    %132 = vector.broadcast %cst_48 : f32 to vector<2x16xf32>
    %133 = arith.mulf %132, %131 : vector<2x16xf32>
    %134 = math.tanh %133 : vector<2x16xf32>
    %cst_49 = arith.constant 1.000000e+00 : f32
    %135 = vector.broadcast %cst_49 : f32 to vector<2x16xf32>
    %136 = arith.addf %134, %135 : vector<2x16xf32>
    %cst_50 = arith.constant 5.000000e-01 : f32
    %137 = vector.broadcast %cst_50 : f32 to vector<2x16xf32>
    %138 = arith.mulf %137, %136 : vector<2x16xf32>
    %139 = vector.extract_strided_slice %122 {offsets = [0, 32], sizes = [2, 16], strides = [1, 1]} : vector<2x64xf32> to vector<2x16xf32>
    %140 = math.tanh %139 : vector<2x16xf32>
    %141 = vector.extract_strided_slice %122 {offsets = [0, 48], sizes = [2, 16], strides = [1, 1]} : vector<2x64xf32> to vector<2x16xf32>
    %cst_51 = arith.constant 5.000000e-01 : f32
    %142 = vector.broadcast %cst_51 : f32 to vector<2x16xf32>
    %143 = arith.mulf %142, %141 : vector<2x16xf32>
    %144 = math.tanh %143 : vector<2x16xf32>
    %cst_52 = arith.constant 1.000000e+00 : f32
    %145 = vector.broadcast %cst_52 : f32 to vector<2x16xf32>
    %146 = arith.addf %144, %145 : vector<2x16xf32>
    %cst_53 = arith.constant 5.000000e-01 : f32
    %147 = vector.broadcast %cst_53 : f32 to vector<2x16xf32>
    %148 = arith.mulf %147, %146 : vector<2x16xf32>
    %149 = arith.mulf %138, %114 : vector<2x16xf32>
    %150 = arith.mulf %130, %140 : vector<2x16xf32>
    %151 = arith.addf %149, %150 : vector<2x16xf32>
    %152 = math.tanh %151 : vector<2x16xf32>
    %153 = arith.mulf %148, %152 : vector<2x16xf32>
    %cst_54 = arith.constant 0.000000e+00 : f32
    %154 = vector.broadcast %cst_54 : f32 to vector<2x16xf32>
    %155 = arith.maximumf %153, %154 : vector<2x16xf32>
    %c6 = arith.constant 6 : index
    %c0_55 = arith.constant 0 : index
    %156 = vector.load %arg3[%c6, %c0_55] : memref<16x16xf32, #tpu.memory_space<vmem>>, vector<2x16xf32>
    tpu.vector_store %arg3[%c6, %c0_55], %155 {strides = array<i32>} : memref<16x16xf32, #tpu.memory_space<vmem>>, vector<2x16xf32>,
    %157 = vector.extract_strided_slice %5 {offsets = [8, 0], sizes = [2, 64], strides = [1, 1]} : vector<16x64xf32> to vector<2x64xf32>
    %cst_56 = arith.constant dense<0.000000e+00> : vector<2x64xf32>
    %158 = tpu.matmul %153, %6, %cst_56 {dimension_numbers = #tpu.dot_dimension_numbers<[1], [0], [0], [1], [0, 0, 1, 1], [], []>} : vector<2x16xf32>, vector<16x64xf32>, vector<2x64xf32> -> vector<2x64xf32>
    %159 = arith.addf %157, %158 : vector<2x64xf32>
    %160 = vector.extract_strided_slice %159 {offsets = [0, 0], sizes = [2, 16], strides = [1, 1]} : vector<2x64xf32> to vector<2x16xf32>
    %cst_57 = arith.constant 5.000000e-01 : f32
    %161 = vector.broadcast %cst_57 : f32 to vector<2x16xf32>
    %162 = arith.mulf %161, %160 : vector<2x16xf32>
    %163 = math.tanh %162 : vector<2x16xf32>
    %cst_58 = arith.constant 1.000000e+00 : f32
    %164 = vector.broadcast %cst_58 : f32 to vector<2x16xf32>
    %165 = arith.addf %163, %164 : vector<2x16xf32>
    %cst_59 = arith.constant 5.000000e-01 : f32
    %166 = vector.broadcast %cst_59 : f32 to vector<2x16xf32>
    %167 = arith.mulf %166, %165 : vector<2x16xf32>
    %168 = vector.extract_strided_slice %159 {offsets = [0, 16], sizes = [2, 16], strides = [1, 1]} : vector<2x64xf32> to vector<2x16xf32>
    %cst_60 = arith.constant 5.000000e-01 : f32
    %169 = vector.broadcast %cst_60 : f32 to vector<2x16xf32>
    %170 = arith.mulf %169, %168 : vector<2x16xf32>
    %171 = math.tanh %170 : vector<2x16xf32>
    %cst_61 = arith.constant 1.000000e+00 : f32
    %172 = vector.broadcast %cst_61 : f32 to vector<2x16xf32>
    %173 = arith.addf %171, %172 : vector<2x16xf32>
    %cst_62 = arith.constant 5.000000e-01 : f32
    %174 = vector.broadcast %cst_62 : f32 to vector<2x16xf32>
    %175 = arith.mulf %174, %173 : vector<2x16xf32>
    %176 = vector.extract_strided_slice %159 {offsets = [0, 32], sizes = [2, 16], strides = [1, 1]} : vector<2x64xf32> to vector<2x16xf32>
    %177 = math.tanh %176 : vector<2x16xf32>
    %178 = vector.extract_strided_slice %159 {offsets = [0, 48], sizes = [2, 16], strides = [1, 1]} : vector<2x64xf32> to vector<2x16xf32>
    %cst_63 = arith.constant 5.000000e-01 : f32
    %179 = vector.broadcast %cst_63 : f32 to vector<2x16xf32>
    %180 = arith.mulf %179, %178 : vector<2x16xf32>
    %181 = math.tanh %180 : vector<2x16xf32>
    %cst_64 = arith.constant 1.000000e+00 : f32
    %182 = vector.broadcast %cst_64 : f32 to vector<2x16xf32>
    %183 = arith.addf %181, %182 : vector<2x16xf32>
    %cst_65 = arith.constant 5.000000e-01 : f32
    %184 = vector.broadcast %cst_65 : f32 to vector<2x16xf32>
    %185 = arith.mulf %184, %183 : vector<2x16xf32>
    %186 = arith.mulf %175, %151 : vector<2x16xf32>
    %187 = arith.mulf %167, %177 : vector<2x16xf32>
    %188 = arith.addf %186, %187 : vector<2x16xf32>
    %189 = math.tanh %188 : vector<2x16xf32>
    %190 = arith.mulf %185, %189 : vector<2x16xf32>
    %cst_66 = arith.constant 0.000000e+00 : f32
    %191 = vector.broadcast %cst_66 : f32 to vector<2x16xf32>
    %192 = arith.maximumf %190, %191 : vector<2x16xf32>
    %c8_67 = arith.constant 8 : index
    %c0_68 = arith.constant 0 : index
    %193 = vector.load %arg3[%c8_67, %c0_68] : memref<16x16xf32, #tpu.memory_space<vmem>>, vector<2x16xf32>
    tpu.vector_store %arg3[%c8_67, %c0_68], %192 {strides = array<i32>} : memref<16x16xf32, #tpu.memory_space<vmem>>, vector<2x16xf32>,
    %194 = vector.extract_strided_slice %5 {offsets = [10, 0], sizes = [2, 64], strides = [1, 1]} : vector<16x64xf32> to vector<2x64xf32>
    %cst_69 = arith.constant dense<0.000000e+00> : vector<2x64xf32>
    %195 = tpu.matmul %190, %6, %cst_69 {dimension_numbers = #tpu.dot_dimension_numbers<[1], [0], [0], [1], [0, 0, 1, 1], [], []>} : vector<2x16xf32>, vector<16x64xf32>, vector<2x64xf32> -> vector<2x64xf32>
    %196 = arith.addf %194, %195 : vector<2x64xf32>
    %197 = vector.extract_strided_slice %196 {offsets = [0, 0], sizes = [2, 16], strides = [1, 1]} : vector<2x64xf32> to vector<2x16xf32>
    %cst_70 = arith.constant 5.000000e-01 : f32
    %198 = vector.broadcast %cst_70 : f32 to vector<2x16xf32>
    %199 = arith.mulf %198, %197 : vector<2x16xf32>
    %200 = math.tanh %199 : vector<2x16xf32>
    %cst_71 = arith.constant 1.000000e+00 : f32
    %201 = vector.broadcast %cst_71 : f32 to vector<2x16xf32>
    %202 = arith.addf %200, %201 : vector<2x16xf32>
    %cst_72 = arith.constant 5.000000e-01 : f32
    %203 = vector.broadcast %cst_72 : f32 to vector<2x16xf32>
    %204 = arith.mulf %203, %202 : vector<2x16xf32>
    %205 = vector.extract_strided_slice %196 {offsets = [0, 16], sizes = [2, 16], strides = [1, 1]} : vector<2x64xf32> to vector<2x16xf32>
    %cst_73 = arith.constant 5.000000e-01 : f32
    %206 = vector.broadcast %cst_73 : f32 to vector<2x16xf32>
    %207 = arith.mulf %206, %205 : vector<2x16xf32>
    %208 = math.tanh %207 : vector<2x16xf32>
    %cst_74 = arith.constant 1.000000e+00 : f32
    %209 = vector.broadcast %cst_74 : f32 to vector<2x16xf32>
    %210 = arith.addf %208, %209 : vector<2x16xf32>
    %cst_75 = arith.constant 5.000000e-01 : f32
    %211 = vector.broadcast %cst_75 : f32 to vector<2x16xf32>
    %212 = arith.mulf %211, %210 : vector<2x16xf32>
    %213 = vector.extract_strided_slice %196 {offsets = [0, 32], sizes = [2, 16], strides = [1, 1]} : vector<2x64xf32> to vector<2x16xf32>
    %214 = math.tanh %213 : vector<2x16xf32>
    %215 = vector.extract_strided_slice %196 {offsets = [0, 48], sizes = [2, 16], strides = [1, 1]} : vector<2x64xf32> to vector<2x16xf32>
    %cst_76 = arith.constant 5.000000e-01 : f32
    %216 = vector.broadcast %cst_76 : f32 to vector<2x16xf32>
    %217 = arith.mulf %216, %215 : vector<2x16xf32>
    %218 = math.tanh %217 : vector<2x16xf32>
    %cst_77 = arith.constant 1.000000e+00 : f32
    %219 = vector.broadcast %cst_77 : f32 to vector<2x16xf32>
    %220 = arith.addf %218, %219 : vector<2x16xf32>
    %cst_78 = arith.constant 5.000000e-01 : f32
    %221 = vector.broadcast %cst_78 : f32 to vector<2x16xf32>
    %222 = arith.mulf %221, %220 : vector<2x16xf32>
    %223 = arith.mulf %212, %188 : vector<2x16xf32>
    %224 = arith.mulf %204, %214 : vector<2x16xf32>
    %225 = arith.addf %223, %224 : vector<2x16xf32>
    %226 = math.tanh %225 : vector<2x16xf32>
    %227 = arith.mulf %222, %226 : vector<2x16xf32>
    %cst_79 = arith.constant 0.000000e+00 : f32
    %228 = vector.broadcast %cst_79 : f32 to vector<2x16xf32>
    %229 = arith.maximumf %227, %228 : vector<2x16xf32>
    %c10 = arith.constant 10 : index
    %c0_80 = arith.constant 0 : index
    %230 = vector.load %arg3[%c10, %c0_80] : memref<16x16xf32, #tpu.memory_space<vmem>>, vector<2x16xf32>
    tpu.vector_store %arg3[%c10, %c0_80], %229 {strides = array<i32>} : memref<16x16xf32, #tpu.memory_space<vmem>>, vector<2x16xf32>,
    %231 = vector.extract_strided_slice %5 {offsets = [12, 0], sizes = [2, 64], strides = [1, 1]} : vector<16x64xf32> to vector<2x64xf32>
    %cst_81 = arith.constant dense<0.000000e+00> : vector<2x64xf32>
    %232 = tpu.matmul %227, %6, %cst_81 {dimension_numbers = #tpu.dot_dimension_numbers<[1], [0], [0], [1], [0, 0, 1, 1], [], []>} : vector<2x16xf32>, vector<16x64xf32>, vector<2x64xf32> -> vector<2x64xf32>
    %233 = arith.addf %231, %232 : vector<2x64xf32>
    %234 = vector.extract_strided_slice %233 {offsets = [0, 0], sizes = [2, 16], strides = [1, 1]} : vector<2x64xf32> to vector<2x16xf32>
    %cst_82 = arith.constant 5.000000e-01 : f32
    %235 = vector.broadcast %cst_82 : f32 to vector<2x16xf32>
    %236 = arith.mulf %235, %234 : vector<2x16xf32>
    %237 = math.tanh %236 : vector<2x16xf32>
    %cst_83 = arith.constant 1.000000e+00 : f32
    %238 = vector.broadcast %cst_83 : f32 to vector<2x16xf32>
    %239 = arith.addf %237, %238 : vector<2x16xf32>
    %cst_84 = arith.constant 5.000000e-01 : f32
    %240 = vector.broadcast %cst_84 : f32 to vector<2x16xf32>
    %241 = arith.mulf %240, %239 : vector<2x16xf32>
    %242 = vector.extract_strided_slice %233 {offsets = [0, 16], sizes = [2, 16], strides = [1, 1]} : vector<2x64xf32> to vector<2x16xf32>
    %cst_85 = arith.constant 5.000000e-01 : f32
    %243 = vector.broadcast %cst_85 : f32 to vector<2x16xf32>
    %244 = arith.mulf %243, %242 : vector<2x16xf32>
    %245 = math.tanh %244 : vector<2x16xf32>
    %cst_86 = arith.constant 1.000000e+00 : f32
    %246 = vector.broadcast %cst_86 : f32 to vector<2x16xf32>
    %247 = arith.addf %245, %246 : vector<2x16xf32>
    %cst_87 = arith.constant 5.000000e-01 : f32
    %248 = vector.broadcast %cst_87 : f32 to vector<2x16xf32>
    %249 = arith.mulf %248, %247 : vector<2x16xf32>
    %250 = vector.extract_strided_slice %233 {offsets = [0, 32], sizes = [2, 16], strides = [1, 1]} : vector<2x64xf32> to vector<2x16xf32>
    %251 = math.tanh %250 : vector<2x16xf32>
    %252 = vector.extract_strided_slice %233 {offsets = [0, 48], sizes = [2, 16], strides = [1, 1]} : vector<2x64xf32> to vector<2x16xf32>
    %cst_88 = arith.constant 5.000000e-01 : f32
    %253 = vector.broadcast %cst_88 : f32 to vector<2x16xf32>
    %254 = arith.mulf %253, %252 : vector<2x16xf32>
    %255 = math.tanh %254 : vector<2x16xf32>
    %cst_89 = arith.constant 1.000000e+00 : f32
    %256 = vector.broadcast %cst_89 : f32 to vector<2x16xf32>
    %257 = arith.addf %255, %256 : vector<2x16xf32>
    %cst_90 = arith.constant 5.000000e-01 : f32
    %258 = vector.broadcast %cst_90 : f32 to vector<2x16xf32>
    %259 = arith.mulf %258, %257 : vector<2x16xf32>
    %260 = arith.mulf %249, %225 : vector<2x16xf32>
    %261 = arith.mulf %241, %251 : vector<2x16xf32>
    %262 = arith.addf %260, %261 : vector<2x16xf32>
    %263 = math.tanh %262 : vector<2x16xf32>
    %264 = arith.mulf %259, %263 : vector<2x16xf32>
    %cst_91 = arith.constant 0.000000e+00 : f32
    %265 = vector.broadcast %cst_91 : f32 to vector<2x16xf32>
    %266 = arith.maximumf %264, %265 : vector<2x16xf32>
    %c12 = arith.constant 12 : index
    %c0_92 = arith.constant 0 : index
    %267 = vector.load %arg3[%c12, %c0_92] : memref<16x16xf32, #tpu.memory_space<vmem>>, vector<2x16xf32>
    tpu.vector_store %arg3[%c12, %c0_92], %266 {strides = array<i32>} : memref<16x16xf32, #tpu.memory_space<vmem>>, vector<2x16xf32>,
    %268 = vector.extract_strided_slice %5 {offsets = [14, 0], sizes = [2, 64], strides = [1, 1]} : vector<16x64xf32> to vector<2x64xf32>
    %cst_93 = arith.constant dense<0.000000e+00> : vector<2x64xf32>
    %269 = tpu.matmul %264, %6, %cst_93 {dimension_numbers = #tpu.dot_dimension_numbers<[1], [0], [0], [1], [0, 0, 1, 1], [], []>} : vector<2x16xf32>, vector<16x64xf32>, vector<2x64xf32> -> vector<2x64xf32>
    %270 = arith.addf %268, %269 : vector<2x64xf32>
    %271 = vector.extract_strided_slice %270 {offsets = [0, 0], sizes = [2, 16], strides = [1, 1]} : vector<2x64xf32> to vector<2x16xf32>
    %cst_94 = arith.constant 5.000000e-01 : f32
    %272 = vector.broadcast %cst_94 : f32 to vector<2x16xf32>
    %273 = arith.mulf %272, %271 : vector<2x16xf32>
    %274 = math.tanh %273 : vector<2x16xf32>
    %cst_95 = arith.constant 1.000000e+00 : f32
    %275 = vector.broadcast %cst_95 : f32 to vector<2x16xf32>
    %276 = arith.addf %274, %275 : vector<2x16xf32>
    %cst_96 = arith.constant 5.000000e-01 : f32
    %277 = vector.broadcast %cst_96 : f32 to vector<2x16xf32>
    %278 = arith.mulf %277, %276 : vector<2x16xf32>
    %279 = vector.extract_strided_slice %270 {offsets = [0, 16], sizes = [2, 16], strides = [1, 1]} : vector<2x64xf32> to vector<2x16xf32>
    %cst_97 = arith.constant 5.000000e-01 : f32
    %280 = vector.broadcast %cst_97 : f32 to vector<2x16xf32>
    %281 = arith.mulf %280, %279 : vector<2x16xf32>
    %282 = math.tanh %281 : vector<2x16xf32>
    %cst_98 = arith.constant 1.000000e+00 : f32
    %283 = vector.broadcast %cst_98 : f32 to vector<2x16xf32>
    %284 = arith.addf %282, %283 : vector<2x16xf32>
    %cst_99 = arith.constant 5.000000e-01 : f32
    %285 = vector.broadcast %cst_99 : f32 to vector<2x16xf32>
    %286 = arith.mulf %285, %284 : vector<2x16xf32>
    %287 = vector.extract_strided_slice %270 {offsets = [0, 32], sizes = [2, 16], strides = [1, 1]} : vector<2x64xf32> to vector<2x16xf32>
    %288 = math.tanh %287 : vector<2x16xf32>
    %289 = vector.extract_strided_slice %270 {offsets = [0, 48], sizes = [2, 16], strides = [1, 1]} : vector<2x64xf32> to vector<2x16xf32>
    %cst_100 = arith.constant 5.000000e-01 : f32
    %290 = vector.broadcast %cst_100 : f32 to vector<2x16xf32>
    %291 = arith.mulf %290, %289 : vector<2x16xf32>
    %292 = math.tanh %291 : vector<2x16xf32>
    %cst_101 = arith.constant 1.000000e+00 : f32
    %293 = vector.broadcast %cst_101 : f32 to vector<2x16xf32>
    %294 = arith.addf %292, %293 : vector<2x16xf32>
    %cst_102 = arith.constant 5.000000e-01 : f32
    %295 = vector.broadcast %cst_102 : f32 to vector<2x16xf32>
    %296 = arith.mulf %295, %294 : vector<2x16xf32>
    %297 = arith.mulf %286, %262 : vector<2x16xf32>
    %298 = arith.mulf %278, %288 : vector<2x16xf32>
    %299 = arith.addf %297, %298 : vector<2x16xf32>
    %300 = math.tanh %299 : vector<2x16xf32>
    %301 = arith.mulf %296, %300 : vector<2x16xf32>
    %cst_103 = arith.constant 0.000000e+00 : f32
    %302 = vector.broadcast %cst_103 : f32 to vector<2x16xf32>
    %303 = arith.maximumf %301, %302 : vector<2x16xf32>
    %c14 = arith.constant 14 : index
    %c0_104 = arith.constant 0 : index
    %304 = vector.load %arg3[%c14, %c0_104] : memref<16x16xf32, #tpu.memory_space<vmem>>, vector<2x16xf32>
    tpu.vector_store %arg3[%c14, %c0_104], %303 {strides = array<i32>} : memref<16x16xf32, #tpu.memory_space<vmem>>, vector<2x16xf32>,
    %c0_105 = arith.constant 0 : index
    %c0_106 = arith.constant 0 : index
    %305 = tpu.strided_load %arg3[%c0_105, %c0_106] {strides = array<i32: 2, 1>} : memref<16x16xf32, #tpu.memory_space<vmem>>, vector<8x16xf32>
    %c1 = arith.constant 1 : index
    %c0_107 = arith.constant 0 : index
    %306 = tpu.strided_load %arg3[%c1, %c0_107] {strides = array<i32: 2, 1>} : memref<16x16xf32, #tpu.memory_space<vmem>>, vector<8x16xf32>
    %307 = tpu.concatenate %305, %306 in 0 : vector<8x16xf32>, vector<8x16xf32> -> vector<16x16xf32>
    %c104 = arith.constant 104 : index
    %c0_108 = arith.constant 0 : index
    %308 = vector.load %arg1[%c104, %c0_108] : memref<192x64xf32, #tpu.memory_space<vmem>>, vector<16x16xf32>
    %cst_109 = arith.constant dense<0.000000e+00> : vector<16x16xf32>
    %309 = tpu.matmul %307, %308, %cst_109 {dimension_numbers = #tpu.dot_dimension_numbers<[1], [0], [0], [1], [0, 0, 1, 1], [], []>} : vector<16x16xf32>, vector<16x16xf32>, vector<16x16xf32> -> vector<16x16xf32>
    %c136 = arith.constant 136 : index
    %c0_110 = arith.constant 0 : index
    %310 = vector.load %arg1[%c136, %c0_110] : memref<192x64xf32, #tpu.memory_space<vmem>>, vector<1x16xf32>
    %311 = vector.broadcast %310 : vector<1x16xf32> to vector<16x16xf32>
    %312 = arith.addf %309, %311 : vector<16x16xf32>
    %c72 = arith.constant 72 : index
    %c0_111 = arith.constant 0 : index
    %313 = vector.load %arg1[%c72, %c0_111] : memref<192x64xf32, #tpu.memory_space<vmem>>, vector<32x16xf32>
    %c128 = arith.constant 128 : index
    %c0_112 = arith.constant 0 : index
    %314 = vector.load %arg1[%c128, %c0_112] : memref<192x64xf32, #tpu.memory_space<vmem>>, vector<1x16xf32>
    %c120 = arith.constant 120 : index
    %c0_113 = arith.constant 0 : index
    %315 = vector.load %arg1[%c120, %c0_113] : memref<192x64xf32, #tpu.memory_space<vmem>>, vector<1x16xf32>
    %c32 = arith.constant 32 : index
    %c0_114 = arith.constant 0 : index
    %316 = vector.load %arg1[%c32, %c0_114] : memref<192x64xf32, #tpu.memory_space<vmem>>, vector<32x64xf32>
    %c64 = arith.constant 64 : index
    %c0_115 = arith.constant 0 : index
    %317 = vector.load %arg1[%c64, %c0_115] : memref<192x64xf32, #tpu.memory_space<vmem>>, vector<1x64xf32>
    %cst_116 = arith.constant 0.000000e+00 : f32
    %318 = vector.broadcast %cst_116 : f32 to vector<8x16xf32>
    %cst_117 = arith.constant 0.000000e+00 : f32
    %319 = vector.broadcast %cst_117 : f32 to vector<8x16xf32>
    %320 = tpu.concatenate %318, %319 in 1 : vector<8x16xf32>, vector<8x16xf32> -> vector<8x32xf32>
    %cst_118 = arith.constant dense<0.000000e+00> : vector<8x16xf32>
    %321 = tpu.matmul %320, %313, %cst_118 {dimension_numbers = #tpu.dot_dimension_numbers<[1], [0], [0], [1], [0, 0, 1, 1], [], []>} : vector<8x32xf32>, vector<32x16xf32>, vector<8x16xf32> -> vector<8x16xf32>
    %322 = vector.broadcast %314 : vector<1x16xf32> to vector<8x16xf32>
    %323 = arith.addf %321, %322 : vector<8x16xf32>
    %324 = vector.extract_strided_slice %312 {offsets = [0, 0], sizes = [8, 16], strides = [1, 1]} : vector<16x16xf32> to vector<8x16xf32>
    %325 = arith.addf %323, %324 : vector<8x16xf32>
    %326 = math.tanh %325 : vector<8x16xf32>
    %327 = vector.broadcast %315 : vector<1x16xf32> to vector<8x16xf32>
    %328 = arith.mulf %326, %327 : vector<8x16xf32>
    %cst_119 = arith.constant dense<0.000000e+00> : vector<8xf32>
    %329 = vector.multi_reduction <add>, %328, %cst_119 [1] : vector<8x16xf32> to vector<8xf32>
    %330 = vector.shape_cast %329 : vector<8xf32> to vector<8x1xf32>
    %cst_120 = arith.constant dense<0xFF800000> : vector<1xf32>
    %331 = vector.multi_reduction <maximumf>, %330, %cst_120 [0] : vector<8x1xf32> to vector<1xf32>
    %332 = vector.shape_cast %331 : vector<1xf32> to vector<1x1xf32>
    %333 = vector.broadcast %332 : vector<1x1xf32> to vector<8x1xf32>
    %334 = arith.subf %330, %333 : vector<8x1xf32>
    %335 = math.exp %334 : vector<8x1xf32>
    %cst_121 = arith.constant dense<0.000000e+00> : vector<1xf32>
    %336 = vector.multi_reduction <add>, %335, %cst_121 [0] : vector<8x1xf32> to vector<1xf32>
    %337 = vector.shape_cast %336 : vector<1xf32> to vector<1x1xf32>
    %338 = vector.broadcast %337 : vector<1x1xf32> to vector<8x1xf32>
    %339 = arith.divf %335, %338 : vector<8x1xf32>
    %340 = vector.broadcast %339 : vector<8x1xf32> to vector<8x16xf32>
    %341 = arith.mulf %340, %305 : vector<8x16xf32>
    %342 = tpu.concatenate %341, %318 in 1 : vector<8x16xf32>, vector<8x16xf32> -> vector<8x32xf32>
    %cst_122 = arith.constant dense<0.000000e+00> : vector<8x64xf32>
    %343 = tpu.matmul %342, %316, %cst_122 {dimension_numbers = #tpu.dot_dimension_numbers<[1], [0], [0], [1], [0, 0, 1, 1], [], []>} : vector<8x32xf32>, vector<32x64xf32>, vector<8x64xf32> -> vector<8x64xf32>
    %344 = vector.broadcast %317 : vector<1x64xf32> to vector<8x64xf32>
    %345 = arith.addf %343, %344 : vector<8x64xf32>
    %346 = vector.extract_strided_slice %345 {offsets = [0, 0], sizes = [8, 16], strides = [1, 1]} : vector<8x64xf32> to vector<8x16xf32>
    %cst_123 = arith.constant 5.000000e-01 : f32
    %347 = vector.broadcast %cst_123 : f32 to vector<8x16xf32>
    %348 = arith.mulf %347, %346 : vector<8x16xf32>
    %349 = math.tanh %348 : vector<8x16xf32>
    %cst_124 = arith.constant 1.000000e+00 : f32
    %350 = vector.broadcast %cst_124 : f32 to vector<8x16xf32>
    %351 = arith.addf %349, %350 : vector<8x16xf32>
    %cst_125 = arith.constant 5.000000e-01 : f32
    %352 = vector.broadcast %cst_125 : f32 to vector<8x16xf32>
    %353 = arith.mulf %352, %351 : vector<8x16xf32>
    %354 = vector.extract_strided_slice %345 {offsets = [0, 16], sizes = [8, 16], strides = [1, 1]} : vector<8x64xf32> to vector<8x16xf32>
    %cst_126 = arith.constant 5.000000e-01 : f32
    %355 = vector.broadcast %cst_126 : f32 to vector<8x16xf32>
    %356 = arith.mulf %355, %354 : vector<8x16xf32>
    %357 = math.tanh %356 : vector<8x16xf32>
    %cst_127 = arith.constant 1.000000e+00 : f32
    %358 = vector.broadcast %cst_127 : f32 to vector<8x16xf32>
    %359 = arith.addf %357, %358 : vector<8x16xf32>
    %cst_128 = arith.constant 5.000000e-01 : f32
    %360 = vector.broadcast %cst_128 : f32 to vector<8x16xf32>
    %361 = arith.mulf %360, %359 : vector<8x16xf32>
    %362 = vector.extract_strided_slice %345 {offsets = [0, 32], sizes = [8, 16], strides = [1, 1]} : vector<8x64xf32> to vector<8x16xf32>
    %363 = math.tanh %362 : vector<8x16xf32>
    %364 = vector.extract_strided_slice %345 {offsets = [0, 48], sizes = [8, 16], strides = [1, 1]} : vector<8x64xf32> to vector<8x16xf32>
    %cst_129 = arith.constant 5.000000e-01 : f32
    %365 = vector.broadcast %cst_129 : f32 to vector<8x16xf32>
    %366 = arith.mulf %365, %364 : vector<8x16xf32>
    %367 = math.tanh %366 : vector<8x16xf32>
    %cst_130 = arith.constant 1.000000e+00 : f32
    %368 = vector.broadcast %cst_130 : f32 to vector<8x16xf32>
    %369 = arith.addf %367, %368 : vector<8x16xf32>
    %cst_131 = arith.constant 5.000000e-01 : f32
    %370 = vector.broadcast %cst_131 : f32 to vector<8x16xf32>
    %371 = arith.mulf %370, %369 : vector<8x16xf32>
    %372 = arith.mulf %361, %319 : vector<8x16xf32>
    %373 = arith.mulf %353, %363 : vector<8x16xf32>
    %374 = arith.addf %372, %373 : vector<8x16xf32>
    %375 = math.tanh %374 : vector<8x16xf32>
    %376 = arith.mulf %371, %375 : vector<8x16xf32>
    %377 = tpu.concatenate %376, %374 in 1 : vector<8x16xf32>, vector<8x16xf32> -> vector<8x32xf32>
    %cst_132 = arith.constant dense<0.000000e+00> : vector<8x16xf32>
    %378 = tpu.matmul %377, %313, %cst_132 {dimension_numbers = #tpu.dot_dimension_numbers<[1], [0], [0], [1], [0, 0, 1, 1], [], []>} : vector<8x32xf32>, vector<32x16xf32>, vector<8x16xf32> -> vector<8x16xf32>
    %379 = vector.broadcast %314 : vector<1x16xf32> to vector<8x16xf32>
    %380 = arith.addf %378, %379 : vector<8x16xf32>
    %381 = vector.extract_strided_slice %312 {offsets = [8, 0], sizes = [8, 16], strides = [1, 1]} : vector<16x16xf32> to vector<8x16xf32>
    %382 = arith.addf %380, %381 : vector<8x16xf32>
    %383 = math.tanh %382 : vector<8x16xf32>
    %384 = vector.broadcast %315 : vector<1x16xf32> to vector<8x16xf32>
    %385 = arith.mulf %383, %384 : vector<8x16xf32>
    %cst_133 = arith.constant dense<0.000000e+00> : vector<8xf32>
    %386 = vector.multi_reduction <add>, %385, %cst_133 [1] : vector<8x16xf32> to vector<8xf32>
    %387 = vector.shape_cast %386 : vector<8xf32> to vector<8x1xf32>
    %cst_134 = arith.constant dense<0xFF800000> : vector<1xf32>
    %388 = vector.multi_reduction <maximumf>, %387, %cst_134 [0] : vector<8x1xf32> to vector<1xf32>
    %389 = vector.shape_cast %388 : vector<1xf32> to vector<1x1xf32>
    %390 = vector.broadcast %389 : vector<1x1xf32> to vector<8x1xf32>
    %391 = arith.subf %387, %390 : vector<8x1xf32>
    %392 = math.exp %391 : vector<8x1xf32>
    %cst_135 = arith.constant dense<0.000000e+00> : vector<1xf32>
    %393 = vector.multi_reduction <add>, %392, %cst_135 [0] : vector<8x1xf32> to vector<1xf32>
    %394 = vector.shape_cast %393 : vector<1xf32> to vector<1x1xf32>
    %395 = vector.broadcast %394 : vector<1x1xf32> to vector<8x1xf32>
    %396 = arith.divf %392, %395 : vector<8x1xf32>
    %397 = vector.broadcast %396 : vector<8x1xf32> to vector<8x16xf32>
    %398 = arith.mulf %397, %306 : vector<8x16xf32>
    %399 = tpu.concatenate %398, %376 in 1 : vector<8x16xf32>, vector<8x16xf32> -> vector<8x32xf32>
    %cst_136 = arith.constant dense<0.000000e+00> : vector<8x64xf32>
    %400 = tpu.matmul %399, %316, %cst_136 {dimension_numbers = #tpu.dot_dimension_numbers<[1], [0], [0], [1], [0, 0, 1, 1], [], []>} : vector<8x32xf32>, vector<32x64xf32>, vector<8x64xf32> -> vector<8x64xf32>
    %401 = vector.broadcast %317 : vector<1x64xf32> to vector<8x64xf32>
    %402 = arith.addf %400, %401 : vector<8x64xf32>
    %403 = vector.extract_strided_slice %402 {offsets = [0, 0], sizes = [8, 16], strides = [1, 1]} : vector<8x64xf32> to vector<8x16xf32>
    %cst_137 = arith.constant 5.000000e-01 : f32
    %404 = vector.broadcast %cst_137 : f32 to vector<8x16xf32>
    %405 = arith.mulf %404, %403 : vector<8x16xf32>
    %406 = math.tanh %405 : vector<8x16xf32>
    %cst_138 = arith.constant 1.000000e+00 : f32
    %407 = vector.broadcast %cst_138 : f32 to vector<8x16xf32>
    %408 = arith.addf %406, %407 : vector<8x16xf32>
    %cst_139 = arith.constant 5.000000e-01 : f32
    %409 = vector.broadcast %cst_139 : f32 to vector<8x16xf32>
    %410 = arith.mulf %409, %408 : vector<8x16xf32>
    %411 = vector.extract_strided_slice %402 {offsets = [0, 16], sizes = [8, 16], strides = [1, 1]} : vector<8x64xf32> to vector<8x16xf32>
    %cst_140 = arith.constant 5.000000e-01 : f32
    %412 = vector.broadcast %cst_140 : f32 to vector<8x16xf32>
    %413 = arith.mulf %412, %411 : vector<8x16xf32>
    %414 = math.tanh %413 : vector<8x16xf32>
    %cst_141 = arith.constant 1.000000e+00 : f32
    %415 = vector.broadcast %cst_141 : f32 to vector<8x16xf32>
    %416 = arith.addf %414, %415 : vector<8x16xf32>
    %cst_142 = arith.constant 5.000000e-01 : f32
    %417 = vector.broadcast %cst_142 : f32 to vector<8x16xf32>
    %418 = arith.mulf %417, %416 : vector<8x16xf32>
    %419 = vector.extract_strided_slice %402 {offsets = [0, 32], sizes = [8, 16], strides = [1, 1]} : vector<8x64xf32> to vector<8x16xf32>
    %420 = math.tanh %419 : vector<8x16xf32>
    %421 = vector.extract_strided_slice %402 {offsets = [0, 48], sizes = [8, 16], strides = [1, 1]} : vector<8x64xf32> to vector<8x16xf32>
    %cst_143 = arith.constant 5.000000e-01 : f32
    %422 = vector.broadcast %cst_143 : f32 to vector<8x16xf32>
    %423 = arith.mulf %422, %421 : vector<8x16xf32>
    %424 = math.tanh %423 : vector<8x16xf32>
    %cst_144 = arith.constant 1.000000e+00 : f32
    %425 = vector.broadcast %cst_144 : f32 to vector<8x16xf32>
    %426 = arith.addf %424, %425 : vector<8x16xf32>
    %cst_145 = arith.constant 5.000000e-01 : f32
    %427 = vector.broadcast %cst_145 : f32 to vector<8x16xf32>
    %428 = arith.mulf %427, %426 : vector<8x16xf32>
    %429 = arith.mulf %418, %374 : vector<8x16xf32>
    %430 = arith.mulf %410, %420 : vector<8x16xf32>
    %431 = arith.addf %429, %430 : vector<8x16xf32>
    %432 = math.tanh %431 : vector<8x16xf32>
    %433 = arith.mulf %428, %432 : vector<8x16xf32>
    %434 = tpu.concatenate %376, %433 in 0 : vector<8x16xf32>, vector<8x16xf32> -> vector<16x16xf32>
    %c144 = arith.constant 144 : index
    %c0_146 = arith.constant 0 : index
    %435 = vector.load %arg1[%c144, %c0_146] : memref<192x64xf32, #tpu.memory_space<vmem>>, vector<16x24xf32>
    %cst_147 = arith.constant dense<0.000000e+00> : vector<16x24xf32>
    %436 = tpu.matmul %434, %435, %cst_147 {dimension_numbers = #tpu.dot_dimension_numbers<[1], [0], [0], [1], [0, 0, 1, 1], [], []>} : vector<16x16xf32>, vector<16x24xf32>, vector<16x24xf32> -> vector<16x24xf32>
    %c168 = arith.constant 168 : index
    %c0_148 = arith.constant 0 : index
    %437 = vector.load %arg1[%c168, %c0_148] : memref<192x64xf32, #tpu.memory_space<vmem>>, vector<1x24xf32>
    %438 = vector.broadcast %437 : vector<1x24xf32> to vector<16x24xf32>
    %439 = arith.addf %436, %438 : vector<16x24xf32>
    %c0_149 = arith.constant 0 : index
    %c0_150 = arith.constant 0 : index
    %440 = vector.load %arg4[%c0_149, %c0_150] : memref<16x24xf32, #tpu.memory_space<vmem>>, vector<16x24xf32>
    tpu.vector_store %arg4[%c0_149, %c0_150], %439 {strides = array<i32>} : memref<16x24xf32, #tpu.memory_space<vmem>>, vector<16x24xf32>,
    %c160 = arith.constant 160 : index
    %c0_151 = arith.constant 0 : index
    %441 = vector.load %arg1[%c160, %c0_151] : memref<192x64xf32, #tpu.memory_space<vmem>>, vector<6x24xf32>
    %cst_152 = arith.constant 0.000000e+00 : f32
    %442 = vector.broadcast %cst_152 : f32 to vector<2x6xf32>
    %cst_153 = arith.constant 0.000000e+00 : f32
    %443 = vector.broadcast %cst_153 : f32 to vector<2x6xf32>
    %c0_154 = arith.constant 0 : index
    %c0_155 = arith.constant 0 : index
    %444 = tpu.strided_load %arg4[%c0_154, %c0_155] {strides = array<i32: 8, 1>} : memref<16x24xf32, #tpu.memory_space<vmem>>, vector<2x24xf32>
    %cst_156 = arith.constant dense<0.000000e+00> : vector<2x24xf32>
    %445 = tpu.matmul %442, %441, %cst_156 {dimension_numbers = #tpu.dot_dimension_numbers<[1], [0], [0], [1], [0, 0, 1, 1], [], []>} : vector<2x6xf32>, vector<6x24xf32>, vector<2x24xf32> -> vector<2x24xf32>
    %446 = arith.addf %444, %445 : vector<2x24xf32>
    %447 = vector.extract_strided_slice %446 {offsets = [0, 0], sizes = [2, 6], strides = [1, 1]} : vector<2x24xf32> to vector<2x6xf32>
    %cst_157 = arith.constant 5.000000e-01 : f32
    %448 = vector.broadcast %cst_157 : f32 to vector<2x6xf32>
    %449 = arith.mulf %448, %447 : vector<2x6xf32>
    %450 = math.tanh %449 : vector<2x6xf32>
    %cst_158 = arith.constant 1.000000e+00 : f32
    %451 = vector.broadcast %cst_158 : f32 to vector<2x6xf32>
    %452 = arith.addf %450, %451 : vector<2x6xf32>
    %cst_159 = arith.constant 5.000000e-01 : f32
    %453 = vector.broadcast %cst_159 : f32 to vector<2x6xf32>
    %454 = arith.mulf %453, %452 : vector<2x6xf32>
    %455 = vector.extract_strided_slice %446 {offsets = [0, 6], sizes = [2, 6], strides = [1, 1]} : vector<2x24xf32> to vector<2x6xf32>
    %cst_160 = arith.constant 5.000000e-01 : f32
    %456 = vector.broadcast %cst_160 : f32 to vector<2x6xf32>
    %457 = arith.mulf %456, %455 : vector<2x6xf32>
    %458 = math.tanh %457 : vector<2x6xf32>
    %cst_161 = arith.constant 1.000000e+00 : f32
    %459 = vector.broadcast %cst_161 : f32 to vector<2x6xf32>
    %460 = arith.addf %458, %459 : vector<2x6xf32>
    %cst_162 = arith.constant 5.000000e-01 : f32
    %461 = vector.broadcast %cst_162 : f32 to vector<2x6xf32>
    %462 = arith.mulf %461, %460 : vector<2x6xf32>
    %463 = vector.extract_strided_slice %446 {offsets = [0, 12], sizes = [2, 6], strides = [1, 1]} : vector<2x24xf32> to vector<2x6xf32>
    %464 = math.tanh %463 : vector<2x6xf32>
    %465 = vector.extract_strided_slice %446 {offsets = [0, 18], sizes = [2, 6], strides = [1, 1]} : vector<2x24xf32> to vector<2x6xf32>
    %cst_163 = arith.constant 5.000000e-01 : f32
    %466 = vector.broadcast %cst_163 : f32 to vector<2x6xf32>
    %467 = arith.mulf %466, %465 : vector<2x6xf32>
    %468 = math.tanh %467 : vector<2x6xf32>
    %cst_164 = arith.constant 1.000000e+00 : f32
    %469 = vector.broadcast %cst_164 : f32 to vector<2x6xf32>
    %470 = arith.addf %468, %469 : vector<2x6xf32>
    %cst_165 = arith.constant 5.000000e-01 : f32
    %471 = vector.broadcast %cst_165 : f32 to vector<2x6xf32>
    %472 = arith.mulf %471, %470 : vector<2x6xf32>
    %473 = arith.mulf %462, %443 : vector<2x6xf32>
    %474 = arith.mulf %454, %464 : vector<2x6xf32>
    %475 = arith.addf %473, %474 : vector<2x6xf32>
    %476 = math.tanh %475 : vector<2x6xf32>
    %477 = arith.mulf %472, %476 : vector<2x6xf32>
    %c1_166 = arith.constant 1 : index
    %c0_167 = arith.constant 0 : index
    %478 = tpu.strided_load %arg4[%c1_166, %c0_167] {strides = array<i32: 8, 1>} : memref<16x24xf32, #tpu.memory_space<vmem>>, vector<2x24xf32>
    %cst_168 = arith.constant dense<0.000000e+00> : vector<2x24xf32>
    %479 = tpu.matmul %477, %441, %cst_168 {dimension_numbers = #tpu.dot_dimension_numbers<[1], [0], [0], [1], [0, 0, 1, 1], [], []>} : vector<2x6xf32>, vector<6x24xf32>, vector<2x24xf32> -> vector<2x24xf32>
    %480 = arith.addf %478, %479 : vector<2x24xf32>
    %481 = vector.extract_strided_slice %480 {offsets = [0, 0], sizes = [2, 6], strides = [1, 1]} : vector<2x24xf32> to vector<2x6xf32>
    %cst_169 = arith.constant 5.000000e-01 : f32
    %482 = vector.broadcast %cst_169 : f32 to vector<2x6xf32>
    %483 = arith.mulf %482, %481 : vector<2x6xf32>
    %484 = math.tanh %483 : vector<2x6xf32>
    %cst_170 = arith.constant 1.000000e+00 : f32
    %485 = vector.broadcast %cst_170 : f32 to vector<2x6xf32>
    %486 = arith.addf %484, %485 : vector<2x6xf32>
    %cst_171 = arith.constant 5.000000e-01 : f32
    %487 = vector.broadcast %cst_171 : f32 to vector<2x6xf32>
    %488 = arith.mulf %487, %486 : vector<2x6xf32>
    %489 = vector.extract_strided_slice %480 {offsets = [0, 6], sizes = [2, 6], strides = [1, 1]} : vector<2x24xf32> to vector<2x6xf32>
    %cst_172 = arith.constant 5.000000e-01 : f32
    %490 = vector.broadcast %cst_172 : f32 to vector<2x6xf32>
    %491 = arith.mulf %490, %489 : vector<2x6xf32>
    %492 = math.tanh %491 : vector<2x6xf32>
    %cst_173 = arith.constant 1.000000e+00 : f32
    %493 = vector.broadcast %cst_173 : f32 to vector<2x6xf32>
    %494 = arith.addf %492, %493 : vector<2x6xf32>
    %cst_174 = arith.constant 5.000000e-01 : f32
    %495 = vector.broadcast %cst_174 : f32 to vector<2x6xf32>
    %496 = arith.mulf %495, %494 : vector<2x6xf32>
    %497 = vector.extract_strided_slice %480 {offsets = [0, 12], sizes = [2, 6], strides = [1, 1]} : vector<2x24xf32> to vector<2x6xf32>
    %498 = math.tanh %497 : vector<2x6xf32>
    %499 = vector.extract_strided_slice %480 {offsets = [0, 18], sizes = [2, 6], strides = [1, 1]} : vector<2x24xf32> to vector<2x6xf32>
    %cst_175 = arith.constant 5.000000e-01 : f32
    %500 = vector.broadcast %cst_175 : f32 to vector<2x6xf32>
    %501 = arith.mulf %500, %499 : vector<2x6xf32>
    %502 = math.tanh %501 : vector<2x6xf32>
    %cst_176 = arith.constant 1.000000e+00 : f32
    %503 = vector.broadcast %cst_176 : f32 to vector<2x6xf32>
    %504 = arith.addf %502, %503 : vector<2x6xf32>
    %cst_177 = arith.constant 5.000000e-01 : f32
    %505 = vector.broadcast %cst_177 : f32 to vector<2x6xf32>
    %506 = arith.mulf %505, %504 : vector<2x6xf32>
    %507 = arith.mulf %496, %475 : vector<2x6xf32>
    %508 = arith.mulf %488, %498 : vector<2x6xf32>
    %509 = arith.addf %507, %508 : vector<2x6xf32>
    %510 = math.tanh %509 : vector<2x6xf32>
    %511 = arith.mulf %506, %510 : vector<2x6xf32>
    %c2_178 = arith.constant 2 : index
    %c0_179 = arith.constant 0 : index
    %512 = tpu.strided_load %arg4[%c2_178, %c0_179] {strides = array<i32: 8, 1>} : memref<16x24xf32, #tpu.memory_space<vmem>>, vector<2x24xf32>
    %cst_180 = arith.constant dense<0.000000e+00> : vector<2x24xf32>
    %513 = tpu.matmul %511, %441, %cst_180 {dimension_numbers = #tpu.dot_dimension_numbers<[1], [0], [0], [1], [0, 0, 1, 1], [], []>} : vector<2x6xf32>, vector<6x24xf32>, vector<2x24xf32> -> vector<2x24xf32>
    %514 = arith.addf %512, %513 : vector<2x24xf32>
    %515 = vector.extract_strided_slice %514 {offsets = [0, 0], sizes = [2, 6], strides = [1, 1]} : vector<2x24xf32> to vector<2x6xf32>
    %cst_181 = arith.constant 5.000000e-01 : f32
    %516 = vector.broadcast %cst_181 : f32 to vector<2x6xf32>
    %517 = arith.mulf %516, %515 : vector<2x6xf32>
    %518 = math.tanh %517 : vector<2x6xf32>
    %cst_182 = arith.constant 1.000000e+00 : f32
    %519 = vector.broadcast %cst_182 : f32 to vector<2x6xf32>
    %520 = arith.addf %518, %519 : vector<2x6xf32>
    %cst_183 = arith.constant 5.000000e-01 : f32
    %521 = vector.broadcast %cst_183 : f32 to vector<2x6xf32>
    %522 = arith.mulf %521, %520 : vector<2x6xf32>
    %523 = vector.extract_strided_slice %514 {offsets = [0, 6], sizes = [2, 6], strides = [1, 1]} : vector<2x24xf32> to vector<2x6xf32>
    %cst_184 = arith.constant 5.000000e-01 : f32
    %524 = vector.broadcast %cst_184 : f32 to vector<2x6xf32>
    %525 = arith.mulf %524, %523 : vector<2x6xf32>
    %526 = math.tanh %525 : vector<2x6xf32>
    %cst_185 = arith.constant 1.000000e+00 : f32
    %527 = vector.broadcast %cst_185 : f32 to vector<2x6xf32>
    %528 = arith.addf %526, %527 : vector<2x6xf32>
    %cst_186 = arith.constant 5.000000e-01 : f32
    %529 = vector.broadcast %cst_186 : f32 to vector<2x6xf32>
    %530 = arith.mulf %529, %528 : vector<2x6xf32>
    %531 = vector.extract_strided_slice %514 {offsets = [0, 12], sizes = [2, 6], strides = [1, 1]} : vector<2x24xf32> to vector<2x6xf32>
    %532 = math.tanh %531 : vector<2x6xf32>
    %533 = vector.extract_strided_slice %514 {offsets = [0, 18], sizes = [2, 6], strides = [1, 1]} : vector<2x24xf32> to vector<2x6xf32>
    %cst_187 = arith.constant 5.000000e-01 : f32
    %534 = vector.broadcast %cst_187 : f32 to vector<2x6xf32>
    %535 = arith.mulf %534, %533 : vector<2x6xf32>
    %536 = math.tanh %535 : vector<2x6xf32>
    %cst_188 = arith.constant 1.000000e+00 : f32
    %537 = vector.broadcast %cst_188 : f32 to vector<2x6xf32>
    %538 = arith.addf %536, %537 : vector<2x6xf32>
    %cst_189 = arith.constant 5.000000e-01 : f32
    %539 = vector.broadcast %cst_189 : f32 to vector<2x6xf32>
    %540 = arith.mulf %539, %538 : vector<2x6xf32>
    %541 = arith.mulf %530, %509 : vector<2x6xf32>
    %542 = arith.mulf %522, %532 : vector<2x6xf32>
    %543 = arith.addf %541, %542 : vector<2x6xf32>
    %544 = math.tanh %543 : vector<2x6xf32>
    %545 = arith.mulf %540, %544 : vector<2x6xf32>
    %c3 = arith.constant 3 : index
    %c0_190 = arith.constant 0 : index
    %546 = tpu.strided_load %arg4[%c3, %c0_190] {strides = array<i32: 8, 1>} : memref<16x24xf32, #tpu.memory_space<vmem>>, vector<2x24xf32>
    %cst_191 = arith.constant dense<0.000000e+00> : vector<2x24xf32>
    %547 = tpu.matmul %545, %441, %cst_191 {dimension_numbers = #tpu.dot_dimension_numbers<[1], [0], [0], [1], [0, 0, 1, 1], [], []>} : vector<2x6xf32>, vector<6x24xf32>, vector<2x24xf32> -> vector<2x24xf32>
    %548 = arith.addf %546, %547 : vector<2x24xf32>
    %549 = vector.extract_strided_slice %548 {offsets = [0, 0], sizes = [2, 6], strides = [1, 1]} : vector<2x24xf32> to vector<2x6xf32>
    %cst_192 = arith.constant 5.000000e-01 : f32
    %550 = vector.broadcast %cst_192 : f32 to vector<2x6xf32>
    %551 = arith.mulf %550, %549 : vector<2x6xf32>
    %552 = math.tanh %551 : vector<2x6xf32>
    %cst_193 = arith.constant 1.000000e+00 : f32
    %553 = vector.broadcast %cst_193 : f32 to vector<2x6xf32>
    %554 = arith.addf %552, %553 : vector<2x6xf32>
    %cst_194 = arith.constant 5.000000e-01 : f32
    %555 = vector.broadcast %cst_194 : f32 to vector<2x6xf32>
    %556 = arith.mulf %555, %554 : vector<2x6xf32>
    %557 = vector.extract_strided_slice %548 {offsets = [0, 6], sizes = [2, 6], strides = [1, 1]} : vector<2x24xf32> to vector<2x6xf32>
    %cst_195 = arith.constant 5.000000e-01 : f32
    %558 = vector.broadcast %cst_195 : f32 to vector<2x6xf32>
    %559 = arith.mulf %558, %557 : vector<2x6xf32>
    %560 = math.tanh %559 : vector<2x6xf32>
    %cst_196 = arith.constant 1.000000e+00 : f32
    %561 = vector.broadcast %cst_196 : f32 to vector<2x6xf32>
    %562 = arith.addf %560, %561 : vector<2x6xf32>
    %cst_197 = arith.constant 5.000000e-01 : f32
    %563 = vector.broadcast %cst_197 : f32 to vector<2x6xf32>
    %564 = arith.mulf %563, %562 : vector<2x6xf32>
    %565 = vector.extract_strided_slice %548 {offsets = [0, 12], sizes = [2, 6], strides = [1, 1]} : vector<2x24xf32> to vector<2x6xf32>
    %566 = math.tanh %565 : vector<2x6xf32>
    %567 = vector.extract_strided_slice %548 {offsets = [0, 18], sizes = [2, 6], strides = [1, 1]} : vector<2x24xf32> to vector<2x6xf32>
    %cst_198 = arith.constant 5.000000e-01 : f32
    %568 = vector.broadcast %cst_198 : f32 to vector<2x6xf32>
    %569 = arith.mulf %568, %567 : vector<2x6xf32>
    %570 = math.tanh %569 : vector<2x6xf32>
    %cst_199 = arith.constant 1.000000e+00 : f32
    %571 = vector.broadcast %cst_199 : f32 to vector<2x6xf32>
    %572 = arith.addf %570, %571 : vector<2x6xf32>
    %cst_200 = arith.constant 5.000000e-01 : f32
    %573 = vector.broadcast %cst_200 : f32 to vector<2x6xf32>
    %574 = arith.mulf %573, %572 : vector<2x6xf32>
    %575 = arith.mulf %564, %543 : vector<2x6xf32>
    %576 = arith.mulf %556, %566 : vector<2x6xf32>
    %577 = arith.addf %575, %576 : vector<2x6xf32>
    %578 = math.tanh %577 : vector<2x6xf32>
    %579 = arith.mulf %574, %578 : vector<2x6xf32>
    %c4_201 = arith.constant 4 : index
    %c0_202 = arith.constant 0 : index
    %580 = tpu.strided_load %arg4[%c4_201, %c0_202] {strides = array<i32: 8, 1>} : memref<16x24xf32, #tpu.memory_space<vmem>>, vector<2x24xf32>
    %cst_203 = arith.constant dense<0.000000e+00> : vector<2x24xf32>
    %581 = tpu.matmul %579, %441, %cst_203 {dimension_numbers = #tpu.dot_dimension_numbers<[1], [0], [0], [1], [0, 0, 1, 1], [], []>} : vector<2x6xf32>, vector<6x24xf32>, vector<2x24xf32> -> vector<2x24xf32>
    %582 = arith.addf %580, %581 : vector<2x24xf32>
    %583 = vector.extract_strided_slice %582 {offsets = [0, 0], sizes = [2, 6], strides = [1, 1]} : vector<2x24xf32> to vector<2x6xf32>
    %cst_204 = arith.constant 5.000000e-01 : f32
    %584 = vector.broadcast %cst_204 : f32 to vector<2x6xf32>
    %585 = arith.mulf %584, %583 : vector<2x6xf32>
    %586 = math.tanh %585 : vector<2x6xf32>
    %cst_205 = arith.constant 1.000000e+00 : f32
    %587 = vector.broadcast %cst_205 : f32 to vector<2x6xf32>
    %588 = arith.addf %586, %587 : vector<2x6xf32>
    %cst_206 = arith.constant 5.000000e-01 : f32
    %589 = vector.broadcast %cst_206 : f32 to vector<2x6xf32>
    %590 = arith.mulf %589, %588 : vector<2x6xf32>
    %591 = vector.extract_strided_slice %582 {offsets = [0, 6], sizes = [2, 6], strides = [1, 1]} : vector<2x24xf32> to vector<2x6xf32>
    %cst_207 = arith.constant 5.000000e-01 : f32
    %592 = vector.broadcast %cst_207 : f32 to vector<2x6xf32>
    %593 = arith.mulf %592, %591 : vector<2x6xf32>
    %594 = math.tanh %593 : vector<2x6xf32>
    %cst_208 = arith.constant 1.000000e+00 : f32
    %595 = vector.broadcast %cst_208 : f32 to vector<2x6xf32>
    %596 = arith.addf %594, %595 : vector<2x6xf32>
    %cst_209 = arith.constant 5.000000e-01 : f32
    %597 = vector.broadcast %cst_209 : f32 to vector<2x6xf32>
    %598 = arith.mulf %597, %596 : vector<2x6xf32>
    %599 = vector.extract_strided_slice %582 {offsets = [0, 12], sizes = [2, 6], strides = [1, 1]} : vector<2x24xf32> to vector<2x6xf32>
    %600 = math.tanh %599 : vector<2x6xf32>
    %601 = vector.extract_strided_slice %582 {offsets = [0, 18], sizes = [2, 6], strides = [1, 1]} : vector<2x24xf32> to vector<2x6xf32>
    %cst_210 = arith.constant 5.000000e-01 : f32
    %602 = vector.broadcast %cst_210 : f32 to vector<2x6xf32>
    %603 = arith.mulf %602, %601 : vector<2x6xf32>
    %604 = math.tanh %603 : vector<2x6xf32>
    %cst_211 = arith.constant 1.000000e+00 : f32
    %605 = vector.broadcast %cst_211 : f32 to vector<2x6xf32>
    %606 = arith.addf %604, %605 : vector<2x6xf32>
    %cst_212 = arith.constant 5.000000e-01 : f32
    %607 = vector.broadcast %cst_212 : f32 to vector<2x6xf32>
    %608 = arith.mulf %607, %606 : vector<2x6xf32>
    %609 = arith.mulf %598, %577 : vector<2x6xf32>
    %610 = arith.mulf %590, %600 : vector<2x6xf32>
    %611 = arith.addf %609, %610 : vector<2x6xf32>
    %612 = math.tanh %611 : vector<2x6xf32>
    %613 = arith.mulf %608, %612 : vector<2x6xf32>
    %c5 = arith.constant 5 : index
    %c0_213 = arith.constant 0 : index
    %614 = tpu.strided_load %arg4[%c5, %c0_213] {strides = array<i32: 8, 1>} : memref<16x24xf32, #tpu.memory_space<vmem>>, vector<2x24xf32>
    %cst_214 = arith.constant dense<0.000000e+00> : vector<2x24xf32>
    %615 = tpu.matmul %613, %441, %cst_214 {dimension_numbers = #tpu.dot_dimension_numbers<[1], [0], [0], [1], [0, 0, 1, 1], [], []>} : vector<2x6xf32>, vector<6x24xf32>, vector<2x24xf32> -> vector<2x24xf32>
    %616 = arith.addf %614, %615 : vector<2x24xf32>
    %617 = vector.extract_strided_slice %616 {offsets = [0, 0], sizes = [2, 6], strides = [1, 1]} : vector<2x24xf32> to vector<2x6xf32>
    %cst_215 = arith.constant 5.000000e-01 : f32
    %618 = vector.broadcast %cst_215 : f32 to vector<2x6xf32>
    %619 = arith.mulf %618, %617 : vector<2x6xf32>
    %620 = math.tanh %619 : vector<2x6xf32>
    %cst_216 = arith.constant 1.000000e+00 : f32
    %621 = vector.broadcast %cst_216 : f32 to vector<2x6xf32>
    %622 = arith.addf %620, %621 : vector<2x6xf32>
    %cst_217 = arith.constant 5.000000e-01 : f32
    %623 = vector.broadcast %cst_217 : f32 to vector<2x6xf32>
    %624 = arith.mulf %623, %622 : vector<2x6xf32>
    %625 = vector.extract_strided_slice %616 {offsets = [0, 6], sizes = [2, 6], strides = [1, 1]} : vector<2x24xf32> to vector<2x6xf32>
    %cst_218 = arith.constant 5.000000e-01 : f32
    %626 = vector.broadcast %cst_218 : f32 to vector<2x6xf32>
    %627 = arith.mulf %626, %625 : vector<2x6xf32>
    %628 = math.tanh %627 : vector<2x6xf32>
    %cst_219 = arith.constant 1.000000e+00 : f32
    %629 = vector.broadcast %cst_219 : f32 to vector<2x6xf32>
    %630 = arith.addf %628, %629 : vector<2x6xf32>
    %cst_220 = arith.constant 5.000000e-01 : f32
    %631 = vector.broadcast %cst_220 : f32 to vector<2x6xf32>
    %632 = arith.mulf %631, %630 : vector<2x6xf32>
    %633 = vector.extract_strided_slice %616 {offsets = [0, 12], sizes = [2, 6], strides = [1, 1]} : vector<2x24xf32> to vector<2x6xf32>
    %634 = math.tanh %633 : vector<2x6xf32>
    %635 = vector.extract_strided_slice %616 {offsets = [0, 18], sizes = [2, 6], strides = [1, 1]} : vector<2x24xf32> to vector<2x6xf32>
    %cst_221 = arith.constant 5.000000e-01 : f32
    %636 = vector.broadcast %cst_221 : f32 to vector<2x6xf32>
    %637 = arith.mulf %636, %635 : vector<2x6xf32>
    %638 = math.tanh %637 : vector<2x6xf32>
    %cst_222 = arith.constant 1.000000e+00 : f32
    %639 = vector.broadcast %cst_222 : f32 to vector<2x6xf32>
    %640 = arith.addf %638, %639 : vector<2x6xf32>
    %cst_223 = arith.constant 5.000000e-01 : f32
    %641 = vector.broadcast %cst_223 : f32 to vector<2x6xf32>
    %642 = arith.mulf %641, %640 : vector<2x6xf32>
    %643 = arith.mulf %632, %611 : vector<2x6xf32>
    %644 = arith.mulf %624, %634 : vector<2x6xf32>
    %645 = arith.addf %643, %644 : vector<2x6xf32>
    %646 = math.tanh %645 : vector<2x6xf32>
    %647 = arith.mulf %642, %646 : vector<2x6xf32>
    %c6_224 = arith.constant 6 : index
    %c0_225 = arith.constant 0 : index
    %648 = tpu.strided_load %arg4[%c6_224, %c0_225] {strides = array<i32: 8, 1>} : memref<16x24xf32, #tpu.memory_space<vmem>>, vector<2x24xf32>
    %cst_226 = arith.constant dense<0.000000e+00> : vector<2x24xf32>
    %649 = tpu.matmul %647, %441, %cst_226 {dimension_numbers = #tpu.dot_dimension_numbers<[1], [0], [0], [1], [0, 0, 1, 1], [], []>} : vector<2x6xf32>, vector<6x24xf32>, vector<2x24xf32> -> vector<2x24xf32>
    %650 = arith.addf %648, %649 : vector<2x24xf32>
    %651 = vector.extract_strided_slice %650 {offsets = [0, 0], sizes = [2, 6], strides = [1, 1]} : vector<2x24xf32> to vector<2x6xf32>
    %cst_227 = arith.constant 5.000000e-01 : f32
    %652 = vector.broadcast %cst_227 : f32 to vector<2x6xf32>
    %653 = arith.mulf %652, %651 : vector<2x6xf32>
    %654 = math.tanh %653 : vector<2x6xf32>
    %cst_228 = arith.constant 1.000000e+00 : f32
    %655 = vector.broadcast %cst_228 : f32 to vector<2x6xf32>
    %656 = arith.addf %654, %655 : vector<2x6xf32>
    %cst_229 = arith.constant 5.000000e-01 : f32
    %657 = vector.broadcast %cst_229 : f32 to vector<2x6xf32>
    %658 = arith.mulf %657, %656 : vector<2x6xf32>
    %659 = vector.extract_strided_slice %650 {offsets = [0, 6], sizes = [2, 6], strides = [1, 1]} : vector<2x24xf32> to vector<2x6xf32>
    %cst_230 = arith.constant 5.000000e-01 : f32
    %660 = vector.broadcast %cst_230 : f32 to vector<2x6xf32>
    %661 = arith.mulf %660, %659 : vector<2x6xf32>
    %662 = math.tanh %661 : vector<2x6xf32>
    %cst_231 = arith.constant 1.000000e+00 : f32
    %663 = vector.broadcast %cst_231 : f32 to vector<2x6xf32>
    %664 = arith.addf %662, %663 : vector<2x6xf32>
    %cst_232 = arith.constant 5.000000e-01 : f32
    %665 = vector.broadcast %cst_232 : f32 to vector<2x6xf32>
    %666 = arith.mulf %665, %664 : vector<2x6xf32>
    %667 = vector.extract_strided_slice %650 {offsets = [0, 12], sizes = [2, 6], strides = [1, 1]} : vector<2x24xf32> to vector<2x6xf32>
    %668 = math.tanh %667 : vector<2x6xf32>
    %669 = vector.extract_strided_slice %650 {offsets = [0, 18], sizes = [2, 6], strides = [1, 1]} : vector<2x24xf32> to vector<2x6xf32>
    %cst_233 = arith.constant 5.000000e-01 : f32
    %670 = vector.broadcast %cst_233 : f32 to vector<2x6xf32>
    %671 = arith.mulf %670, %669 : vector<2x6xf32>
    %672 = math.tanh %671 : vector<2x6xf32>
    %cst_234 = arith.constant 1.000000e+00 : f32
    %673 = vector.broadcast %cst_234 : f32 to vector<2x6xf32>
    %674 = arith.addf %672, %673 : vector<2x6xf32>
    %cst_235 = arith.constant 5.000000e-01 : f32
    %675 = vector.broadcast %cst_235 : f32 to vector<2x6xf32>
    %676 = arith.mulf %675, %674 : vector<2x6xf32>
    %677 = arith.mulf %666, %645 : vector<2x6xf32>
    %678 = arith.mulf %658, %668 : vector<2x6xf32>
    %679 = arith.addf %677, %678 : vector<2x6xf32>
    %680 = math.tanh %679 : vector<2x6xf32>
    %681 = arith.mulf %676, %680 : vector<2x6xf32>
    %c7 = arith.constant 7 : index
    %c0_236 = arith.constant 0 : index
    %682 = tpu.strided_load %arg4[%c7, %c0_236] {strides = array<i32: 8, 1>} : memref<16x24xf32, #tpu.memory_space<vmem>>, vector<2x24xf32>
    %cst_237 = arith.constant dense<0.000000e+00> : vector<2x24xf32>
    %683 = tpu.matmul %681, %441, %cst_237 {dimension_numbers = #tpu.dot_dimension_numbers<[1], [0], [0], [1], [0, 0, 1, 1], [], []>} : vector<2x6xf32>, vector<6x24xf32>, vector<2x24xf32> -> vector<2x24xf32>
    %684 = arith.addf %682, %683 : vector<2x24xf32>
    %685 = vector.extract_strided_slice %684 {offsets = [0, 0], sizes = [2, 6], strides = [1, 1]} : vector<2x24xf32> to vector<2x6xf32>
    %cst_238 = arith.constant 5.000000e-01 : f32
    %686 = vector.broadcast %cst_238 : f32 to vector<2x6xf32>
    %687 = arith.mulf %686, %685 : vector<2x6xf32>
    %688 = math.tanh %687 : vector<2x6xf32>
    %cst_239 = arith.constant 1.000000e+00 : f32
    %689 = vector.broadcast %cst_239 : f32 to vector<2x6xf32>
    %690 = arith.addf %688, %689 : vector<2x6xf32>
    %cst_240 = arith.constant 5.000000e-01 : f32
    %691 = vector.broadcast %cst_240 : f32 to vector<2x6xf32>
    %692 = arith.mulf %691, %690 : vector<2x6xf32>
    %693 = vector.extract_strided_slice %684 {offsets = [0, 6], sizes = [2, 6], strides = [1, 1]} : vector<2x24xf32> to vector<2x6xf32>
    %cst_241 = arith.constant 5.000000e-01 : f32
    %694 = vector.broadcast %cst_241 : f32 to vector<2x6xf32>
    %695 = arith.mulf %694, %693 : vector<2x6xf32>
    %696 = math.tanh %695 : vector<2x6xf32>
    %cst_242 = arith.constant 1.000000e+00 : f32
    %697 = vector.broadcast %cst_242 : f32 to vector<2x6xf32>
    %698 = arith.addf %696, %697 : vector<2x6xf32>
    %cst_243 = arith.constant 5.000000e-01 : f32
    %699 = vector.broadcast %cst_243 : f32 to vector<2x6xf32>
    %700 = arith.mulf %699, %698 : vector<2x6xf32>
    %701 = vector.extract_strided_slice %684 {offsets = [0, 12], sizes = [2, 6], strides = [1, 1]} : vector<2x24xf32> to vector<2x6xf32>
    %702 = math.tanh %701 : vector<2x6xf32>
    %703 = vector.extract_strided_slice %684 {offsets = [0, 18], sizes = [2, 6], strides = [1, 1]} : vector<2x24xf32> to vector<2x6xf32>
    %cst_244 = arith.constant 5.000000e-01 : f32
    %704 = vector.broadcast %cst_244 : f32 to vector<2x6xf32>
    %705 = arith.mulf %704, %703 : vector<2x6xf32>
    %706 = math.tanh %705 : vector<2x6xf32>
    %cst_245 = arith.constant 1.000000e+00 : f32
    %707 = vector.broadcast %cst_245 : f32 to vector<2x6xf32>
    %708 = arith.addf %706, %707 : vector<2x6xf32>
    %cst_246 = arith.constant 5.000000e-01 : f32
    %709 = vector.broadcast %cst_246 : f32 to vector<2x6xf32>
    %710 = arith.mulf %709, %708 : vector<2x6xf32>
    %711 = arith.mulf %700, %679 : vector<2x6xf32>
    %712 = arith.mulf %692, %702 : vector<2x6xf32>
    %713 = arith.addf %711, %712 : vector<2x6xf32>
    %714 = math.tanh %713 : vector<2x6xf32>
    %715 = arith.mulf %710, %714 : vector<2x6xf32>
    %cst_247 = arith.constant 0.000000e+00 : f32
    %716 = vector.broadcast %cst_247 : f32 to vector<2x6xf32>
    %717 = arith.maximumf %715, %716 : vector<2x6xf32>
    %c176 = arith.constant 176 : index
    %c0_248 = arith.constant 0 : index
    %718 = vector.load %arg1[%c176, %c0_248] : memref<192x64xf32, #tpu.memory_space<vmem>>, vector<6x6xf32>
    %cst_249 = arith.constant dense<0.000000e+00> : vector<2x6xf32>
    %719 = tpu.matmul %717, %718, %cst_249 {dimension_numbers = #tpu.dot_dimension_numbers<[1], [0], [0], [1], [0, 0, 1, 1], [], []>} : vector<2x6xf32>, vector<6x6xf32>, vector<2x6xf32> -> vector<2x6xf32>
    %c184 = arith.constant 184 : index
    %c0_250 = arith.constant 0 : index
    %720 = vector.load %arg1[%c184, %c0_250] : memref<192x64xf32, #tpu.memory_space<vmem>>, vector<1x6xf32>
    %721 = vector.broadcast %720 : vector<1x6xf32> to vector<2x6xf32>
    %722 = arith.addf %719, %721 : vector<2x6xf32>
    %cst_251 = arith.constant 5.000000e-01 : f32
    %723 = vector.broadcast %cst_251 : f32 to vector<2x6xf32>
    %724 = arith.mulf %723, %722 : vector<2x6xf32>
    %725 = math.tanh %724 : vector<2x6xf32>
    %cst_252 = arith.constant 1.000000e+00 : f32
    %726 = vector.broadcast %cst_252 : f32 to vector<2x6xf32>
    %727 = arith.addf %725, %726 : vector<2x6xf32>
    %cst_253 = arith.constant 5.000000e-01 : f32
    %728 = vector.broadcast %cst_253 : f32 to vector<2x6xf32>
    %729 = arith.mulf %728, %727 : vector<2x6xf32>
    %c0_254 = arith.constant 0 : index
    %c0_255 = arith.constant 0 : index
    %730 = vector.load %arg2[%c0_254, %c0_255] : memref<2x6xf32, #tpu.memory_space<vmem>>, vector<2x6xf32>
    tpu.vector_store %arg2[%c0_254, %c0_255], %729 {strides = array<i32>} : memref<2x6xf32, #tpu.memory_space<vmem>>, vector<2x6xf32>,
    return
  }
}

</mosaic_0001>

<bundles_post_ra>
// kernel: forward_pallas.1
= control target key start
LH: loop header
LB: loop body
LE: loop exit
PB: predicated region body
PF: predicated region fallthrough
CT: control target
= control target key end

     0   :  { %vm27_vm0 = vcmask 1045504   ;;  %vm20_vm1 = vcmask 48128   ;;  %v2984_v5 = vmov 0.0|0.0   ;;  %s3366_s0 = inlined_call_operand.vmem [shape: f32[16,6], index: 0, kind: input, shape index: {}]   ;;  %s3367_s1 = inlined_call_operand.vmem [shape: f32[192,64], index: 1, kind: input, shape index: {}]   ;;  %s3368_s2 = inlined_call_operand.hbm [shape: f32[2,6], index: 2, kind: output, shape index: {}]  }
   0x1   :  { %v14_v0 = vld [vmem:[%s3367_s1] sm:$0x3f]  ;;  %v13_v2 = vld [vmem:[%s3366_s0 + $0x8] sm:$0xff]  ;;  %v107_v4 = vld [vmem:[%s3367_s1 + $0x10] sm:$0xff]  ;;  %2770 = vmatprep.subr.bf16.mxu1 %v2984_v5 }
   0x2   :  { %v12_v1 = vld [vmem:[%s3366_s0] sm:$0xff]  ;;  %2606 = vmatprep.subr.msk.mxu0 %vm27_vm0, %v14_v0  ;;  %v106_v3 = vld [vmem:[%s3367_s1 + $0x8] sm:$0xff] }
   0x3   :  { %2608 = vmatprep.mubr.msk.f32.mxu0 %vm20_vm1, %v12_v1  ;;  %2607 = vmatpush3.msk.msra.mxu0 %vm27_vm0, %v14_v0  ;;  %v3030_v6 = vpack.c.bf16 %v107_v4, %v106_v3 }
   0x4   :  { %7 = vsyncpa [#allocation5], 0  ;;  %2609 = vmatmul.mubr.msk.f32.vlgmr.msra.gmra.mrb[0].mxu0 %vm20_vm1, %v13_v2  ;;  %vm2985_vm2 = vmmov 0   ;;  %v2986_v7 = vmov 0.0   ;;  %2773 = vmatprep.subr.bf16.mxu0 %v2984_v5  ;;  %v2492_v8 = vld [vmem:[%s3367_s1 + $0x18] ss:$0 sm:$0xff] }
   0x5   :  { %2615 = vmatprep.mubr.msk.f32.mxu1 %vm2985_vm2, %v2986_v7  ;;  %2772 = vmatpush3.bf16.msra.mxu1 %v3030_v6  ;;  %s2987_s20 = smov 96   ;;  %s2988_s21 = smov 16   ;;  %vm108_vm3 = vcmask 130048   ;;  %vm210_vm4 = vcmask 123904   ;;  %vm433_vm5 = vcmask 128004   ;;  %vm321_vm6 = vcmask 125954  }
   0x6   :  { %2775 = vmatpush3.bf16.msra.mxu0 %v3030_v6  ;;  %2622 = vmatprep.mubr.msk.f32.mxu0 %vm2985_vm2, %v2986_v7  ;;  %s2989_s22 = smov 32   ;;  %s2990_s23 = smov 80   ;;  %vm545_vm7 = vcmask 130054   ;;  %vm1093_vm8 = vcmask 261120   ;;  %vm1584_vm9 = vcmask 195584   ;;  %vm2476_vm10 = vcmask 41984  }
   0x7   :  { %2776 = vmatprep.subr.bf16.mxu1 %v2984_v5  ;;  %2779 = vmatprep.subr.bf16.mxu0 %v2984_v5  ;;  %s2992_s4 = smov 6   ;;  %s2993_s5 = smov 12  }
   0x8   :  { %2616 = vmatmul.mubr.f32.vlgmr.msra.gmra.mrb[0].mxu1 %v2986_v7  ;;  %s2994_s6 = smov 110   ;;  %s2995_s11 = smov [#allocation4]  }
   0x9   :  { %2778 = vmatpush3.bf16.msra.mxu1 %v3030_v6  ;;  %2629 = vmatprep.mubr.msk.f32.mxu1 %vm2985_vm2, %v2986_v7  ;;  %s2484_s12 = sshll.u32 %s2995_s11, 4  ;;  %s2485_s12 = int_to_ptr.vmem [resolvable:$true] %s2484_s12 }
   0xa   :  { %2782 = vmatprep.subr.bf16.mxu1 %v2984_v5  ;;  %s2960_s13 = scalar_lea.vmem %s2485_s12, 32  ;;  %p2965_p1 = scmp.lt.s32.totalorder %s2485_s12, %s2485_s12 }
   0xb   :  { %p2961_p0 = scmp.ne.s32.totalorder %s2485_s12, %s2960_s13  ;;  %p2966_p2 = scmp.lt.s32.totalorder %s2960_s13, %s2960_s13 }
   0xd   :  { %p2967_p3 = por %p2966_p2, %p2965_p1 }
   0xf   :  { %p2968_p4 = pnand %p2967_p3, %p2961_p0 }
  0xd7   :  { %v2610_v9 = vpop.f32.mrb[0].mxu0 }
  0xd8   :  { %v3050_v10 = vadd.f32 %v2610_v9, %v2492_v8  ;;  %v97_v11 = vpop.f32.mrb[1].mxu0 }
  0xd9   :  { %v3052_v12 = vadd.f32 %v2492_v8, %v97_v11 }
  0xdb   :  { %v178_v13 = vpop.f32.mrb[0].mxu1 }
  0xdc   :  { %v182_v14 = vadd.f32 %v178_v13, %v3052_v12  ;;  %v2617_v15 = vpop.f32.mrb[1].mxu1 }
  0xde   :  { %2838 = vtanh.f32 %v182_v14  ;;  %v183_v17 = vmul.f32 0.5, %v182_v14 }
  0xe0   :  { %2840 = vtanh.f32 %v183_v17 }
  0xe8   :  { %v2839_v16 = vpop.eup %2838 }
  0xe9   :  { %190 = vrot.lane.b32.xlu0 %v2839_v16, %s2987_s20 }
  0xea   :  { %v2841_v18 = vpop.eup %2840 }
  0xeb   :  { %v185_v19 = vadd.f32 1.0, %v2841_v18 }
  0xed   :  { %v186_v20 = vmul.f32 0.5, %v185_v19 }
  0xef   :  { %v188_v23 = vmul.f32 0.0, %v186_v20 }
 0x15b   :  { %v191_v21 = vpop.permute.xlu0 %190 }
 0x15c   :  { %v193_v22 = vmul.f32 %v191_v21, %v186_v20 }
 0x15e   :  { %195 = vrot.lane.b32.xlu0 %v193_v22, %s2988_s21 }
 0x1d0   :  { %v196_v24 = vpop.permute.xlu0 %195 }
 0x1d1   :  { %v198_v25 = vadd.f32 %v196_v24, %v188_v23 }
 0x1d3   :  { %2842 = vtanh.f32 %v198_v25  ;;  %v297_v41 = vrot.slane %v198_v25, 6 }
 0x1dd   :  { %v2843_v26 = vpop.eup %2842 }
 0x1de   :  { %201 = vrot.lane.b32.xlu1 %v2843_v26, %s2989_s22 }
 0x250   :  { %v202_v27 = vpop.permute.xlu1 %201 }
 0x251   :  { %v3058_v28 = vmul.f32 %v202_v27, %v186_v20 }
 0x253   :  { %213 = vrot.lane.b32.xlu1 %v3058_v28, %s2990_s23 }
 0x2c5   :  { %v214_v29 = vpop.permute.xlu1 %213 }
 0x2c6   :  { %2623 = vmatmul.mubr.msk.f32.vlgmr.msra.gmra.mrb[2].mxu0 %vm108_vm3, %v214_v29 }
 0x2c7   :  { %2781 = vmatpush3.bf16.msra.mxu0 %v3030_v6  ;;  %2636 = vmatprep.mubr.msk.f32.mxu0 %vm2985_vm2, %v2986_v7 }
 0x2c8   :  { %2785 = vmatprep.subr.bf16.mxu0 %v2984_v5 }
 0x399   :  { %v283_v30 = vpop.f32.mrb[2].mxu0 }
 0x39a   :  { %v288_v31 = vrot.slane %v283_v30, 6  ;;  %v2624_v32 = vpop.f32.mrb[3].mxu0 }
 0x39c   :  { %v290_v33 = vadd.f32 %v288_v31, %v3052_v12 }
 0x39e   :  { %2844 = vtanh.f32 %v290_v33  ;;  %v291_v35 = vmul.f32 0.5, %v290_v33 }
 0x3a0   :  { %2846 = vtanh.f32 %v291_v35 }
 0x3a8   :  { %v2845_v34 = vpop.eup %2844 }
 0x3a9   :  { %301 = vrot.lane.b32.xlu0 %v2845_v34, %s2987_s20 }
 0x3aa   :  { %v2847_v36 = vpop.eup %2846 }
 0x3ab   :  { %v293_v37 = vadd.f32 1.0, %v2847_v36 }
 0x3ad   :  { %v294_v38 = vmul.f32 0.5, %v293_v37 }
 0x3af   :  { %v299_v42 = vmul.f32 %v297_v41, %v294_v38 }
 0x41b   :  { %v302_v39 = vpop.permute.xlu0 %301 }
 0x41c   :  { %v304_v40 = vmul.f32 %v302_v39, %v294_v38 }
 0x41e   :  { %306 = vrot.lane.b32.xlu1 %v304_v40, %s2988_s21 }
 0x490   :  { %v307_v43 = vpop.permute.xlu1 %306 }
 0x491   :  { %v309_v44 = vadd.f32 %v307_v43, %v299_v42 }
 0x493   :  { %2848 = vtanh.f32 %v309_v44  ;;  %v409_v61 = vrot.slane %v309_v44, 6 }
 0x49d   :  { %v2849_v45 = vpop.eup %2848 }
 0x49e   :  { %312 = vrot.lane.b32.xlu0 %v2849_v45, %s2989_s22 }
 0x510   :  { %v313_v46 = vpop.permute.xlu0 %312 }
 0x511   :  { %v3071_v47 = vmul.f32 %v313_v46, %v294_v38 }
 0x513   :  { %v324_v48 = vrot.slane %v3071_v47, 2 }
 0x515   :  { %325 = vrot.lane.b32.xlu1 %v324_v48, %s2990_s23 }
 0x587   :  { %v326_v49 = vpop.permute.xlu1 %325 }
 0x588   :  { %2630 = vmatmul.mubr.msk.f32.vlgmr.msra.gmra.mrb[2].mxu1 %vm108_vm3, %v326_v49 }
 0x589   :  { %2784 = vmatpush3.bf16.msra.mxu1 %v3030_v6  ;;  %2643 = vmatprep.mubr.msk.f32.mxu1 %vm2985_vm2, %v2986_v7 }
 0x58a   :  { %2788 = vmatprep.subr.bf16.mxu1 %v2984_v5 }
 0x65b   :  { %v395_v50 = vpop.f32.mrb[2].mxu1 }
 0x65c   :  { %v400_v51 = vrot.slane %v395_v50, 4  ;;  %v2631_v52 = vpop.f32.mrb[3].mxu1 }
 0x65e   :  { %v402_v53 = vadd.f32 %v400_v51, %v3052_v12 }
 0x660   :  { %2850 = vtanh.f32 %v402_v53  ;;  %v403_v55 = vmul.f32 0.5, %v402_v53 }
 0x662   :  { %2852 = vtanh.f32 %v403_v55 }
 0x66a   :  { %v2851_v54 = vpop.eup %2850 }
 0x66b   :  { %413 = vrot.lane.b32.xlu0 %v2851_v54, %s2987_s20 }
 0x66c   :  { %v2853_v56 = vpop.eup %2852 }
 0x66d   :  { %v405_v57 = vadd.f32 1.0, %v2853_v56 }
 0x66f   :  { %v406_v58 = vmul.f32 0.5, %v405_v57 }
 0x671   :  { %v411_v62 = vmul.f32 %v409_v61, %v406_v58 }
 0x6dd   :  { %v414_v59 = vpop.permute.xlu0 %413 }
 0x6de   :  { %v416_v60 = vmul.f32 %v414_v59, %v406_v58 }
 0x6e0   :  { %418 = vrot.lane.b32.xlu1 %v416_v60, %s2988_s21 }
 0x752   :  { %v419_v63 = vpop.permute.xlu1 %418 }
 0x753   :  { %v421_v0 = vadd.f32 %v419_v63, %v411_v62 }
 0x755   :  { %2854 = vtanh.f32 %v421_v0  ;;  %v521_v22 = vrot.slane %v421_v0, 6 }
 0x75f   :  { %v2855_v1 = vpop.eup %2854 }
 0x760   :  { %424 = vrot.lane.b32.xlu0 %v2855_v1, %s2989_s22 }
 0x7d2   :  { %v425_v2 = vpop.permute.xlu0 %424 }
 0x7d3   :  { %v3084_v3 = vmul.f32 %v425_v2, %v406_v58 }
 0x7d5   :  { %v436_v4 = vrot.slane %v3084_v3, 4 }
 0x7d7   :  { %437 = vrot.lane.b32.xlu1 %v436_v4, %s2990_s23 }
 0x849   :  { %v438_v8 = vpop.permute.xlu1 %437 }
 0x84a   :  { %2637 = vmatmul.mubr.msk.f32.vlgmr.msra.gmra.mrb[4].mxu0 %vm108_vm3, %v438_v8 }
 0x84b   :  { %2787 = vmatpush3.bf16.msra.mxu0 %v3030_v6  ;;  %2650 = vmatprep.mubr.msk.f32.mxu0 %vm2985_vm2, %v2986_v7 }
 0x84c   :  { %2791 = vmatprep.subr.bf16.mxu0 %v2984_v5 }
 0x91d   :  { %v507_v9 = vpop.f32.mrb[4].mxu0 }
 0x91e   :  { %v512_v11 = vrot.slane %v507_v9, 2  ;;  %v2638_v13 = vpop.f32.mrb[5].mxu0 }
 0x920   :  { %v514_v14 = vadd.f32 %v512_v11, %v3052_v12 }
 0x922   :  { %2856 = vtanh.f32 %v514_v14  ;;  %v515_v16 = vmul.f32 0.5, %v514_v14 }
 0x924   :  { %2858 = vtanh.f32 %v515_v16 }
 0x92c   :  { %v2857_v15 = vpop.eup %2856 }
 0x92d   :  { %525 = vrot.lane.b32.xlu0 %v2857_v15, %s2987_s20 }
 0x92e   :  { %v2859_v17 = vpop.eup %2858 }
 0x92f   :  { %v517_v18 = vadd.f32 1.0, %v2859_v17 }
 0x931   :  { %v518_v19 = vmul.f32 0.5, %v517_v18 }
 0x933   :  { %v523_v23 = vmul.f32 %v521_v22, %v518_v19 }
 0x99f   :  { %v526_v20 = vpop.permute.xlu0 %525 }
 0x9a0   :  { %v528_v21 = vmul.f32 %v526_v20, %v518_v19 }
 0x9a2   :  { %530 = vrot.lane.b32.xlu1 %v528_v21, %s2988_s21 }
 0xa14   :  { %v531_v24 = vpop.permute.xlu1 %530 }
 0xa15   :  { %v533_v25 = vadd.f32 %v531_v24, %v523_v23 }
 0xa17   :  { %2860 = vtanh.f32 %v533_v25  ;;  %v630_v41 = vrot.slane %v533_v25, 6 }
 0xa21   :  { %v2861_v26 = vpop.eup %2860 }
 0xa22   :  { %536 = vrot.lane.b32.xlu0 %v2861_v26, %s2989_s22 }
 0xa94   :  { %v537_v12 = vpop.permute.xlu0 %536 }
 0xa95   :  { %v3097_v27 = vmul.f32 %v537_v12, %v518_v19 }
 0xa97   :  { %v548_v29 = vrot.slane %v3097_v27, 6 }
 0xa99   :  { %549 = vrot.lane.b32.xlu1 %v548_v29, %s2990_s23 }
 0xb0b   :  { %v550_v30 = vpop.permute.xlu1 %549 }
 0xb0c   :  { %2644 = vmatmul.mubr.msk.f32.vlgmr.msra.gmra.mrb[4].mxu1 %vm108_vm3, %v550_v30 }
 0xb0d   :  { %2790 = vmatpush3.bf16.msra.mxu1 %v3030_v6  ;;  %2657 = vmatprep.mubr.msk.f32.mxu1 %vm2985_vm2, %v2986_v7 }
 0xbdf   :  { %v619_v31 = vpop.f32.mrb[4].mxu1 }
 0xbe0   :  { %v623_v32 = vadd.f32 %v619_v31, %v3050_v10  ;;  %v2645_v33 = vpop.f32.mrb[5].mxu1 }
 0xbe2   :  { %2862 = vtanh.f32 %v623_v32  ;;  %v624_v35 = vmul.f32 0.5, %v623_v32 }
 0xbe4   :  { %2864 = vtanh.f32 %v624_v35 }
 0xbec   :  { %v2863_v34 = vpop.eup %2862 }
 0xbed   :  { %634 = vrot.lane.b32.xlu0 %v2863_v34, %s2987_s20 }
 0xbee   :  { %v2865_v36 = vpop.eup %2864 }
 0xbef   :  { %v626_v37 = vadd.f32 1.0, %v2865_v36 }
 0xbf1   :  { %v627_v38 = vmul.f32 0.5, %v626_v37 }
 0xbf3   :  { %v632_v42 = vmul.f32 %v630_v41, %v627_v38 }
 0xc5f   :  { %v635_v39 = vpop.permute.xlu0 %634 }
 0xc60   :  { %v637_v40 = vmul.f32 %v635_v39, %v627_v38 }
 0xc62   :  { %639 = vrot.lane.b32.xlu1 %v637_v40, %s2988_s21 }
 0xcd4   :  { %v640_v43 = vpop.permute.xlu1 %639 }
 0xcd5   :  { %v642_v44 = vadd.f32 %v640_v43, %v632_v42  ;;  %v205_v43 = vmax.f32 %v3058_v28, 0.0 }
 0xcd7   :  { %2866 = vtanh.f32 %v642_v44  ;;  %v740_v60 = vrot.slane %v642_v44, 6  ;;  %v428_v44 = vmax.f32 %v3084_v3, 0.0 }
 0xce1   :  { %v2867_v45 = vpop.eup %2866 }
 0xce2   :  { %645 = vrot.lane.b32.xlu0 %v2867_v45, %s2989_s22 }
 0xd54   :  { %v646_v46 = vpop.permute.xlu0 %645 }
 0xd55   :  { %v3109_v48 = vmul.f32 %v646_v46, %v627_v38 }
 0xd57   :  { %656 = vrot.lane.b32.xlu1 %v3109_v48, %s2990_s23 }
 0xdc9   :  { %v657_v49 = vpop.permute.xlu1 %656 }
 0xdca   :  { %2651 = vmatmul.mubr.msk.f32.vlgmr.msra.gmra.mrb[6].mxu0 %vm108_vm3, %v657_v49 }
 0xdcb   :  { %2793 = vmatpush3.bf16.msra.mxu0 %v3030_v6  ;;  %2664 = vmatprep.mubr.msk.f32.mxu0 %vm2985_vm2, %v2986_v7 }
 0xdcc   :  { %2798 = vmatprep.subr.bf16.mxu0 %v2984_v5 }
 0xe9d   :  { %v726_v50 = vpop.f32.mrb[6].mxu0 }
 0xe9e   :  { %v731_v51 = vrot.slane %v726_v50, 6  ;;  %v2652_v52 = vpop.f32.mrb[7].mxu0 }
 0xea0   :  { %v733_v53 = vadd.f32 %v731_v51, %v3050_v10 }
 0xea2   :  { %2868 = vtanh.f32 %v733_v53  ;;  %v734_v55 = vmul.f32 0.5, %v733_v53 }
 0xea4   :  { %2870 = vtanh.f32 %v734_v55  ;;  %v540_v55 = vmax.f32 %v3097_v27, 0.0  ;;  %v991_v27 = vld [vmem:[%s3367_s1 + $0x70] sm:$0xff] }
 0xeac   :  { %v2869_v54 = vpop.eup %2868 }
 0xead   :  { %744 = vrot.lane.b32.xlu0 %v2869_v54, %s2987_s20 }
 0xeae   :  { %v2871_v56 = vpop.eup %2870 }
 0xeaf   :  { %v736_v57 = vadd.f32 1.0, %v2871_v56 }
 0xeb1   :  { %v737_v58 = vmul.f32 0.5, %v736_v57  ;;  %v1078_v57 = vld [vmem:[%s3367_s1 + $0x48] sm:$0xff] }
 0xeb3   :  { %v742_v61 = vmul.f32 %v740_v60, %v737_v58 }
 0xf1f   :  { %v745_v6 = vpop.permute.xlu0 %744 }
 0xf20   :  { %v747_v59 = vmul.f32 %v745_v6, %v737_v58  ;;  %v990_v6 = vld [vmem:[%s3367_s1 + $0x68] sm:$0xff] }
 0xf21   :  { %v2794_v60 = vpack.c.bf16 %v991_v27, %v990_v6 }
 0xf22   :  { %749 = vrot.lane.b32.xlu1 %v747_v59, %s2988_s21  ;;  %v1080_v59 = vld [vmem:[%s3367_s1 + $0x58] sm:$0xff] }
 0xf23   :  { %2795 = vmatprep.subr.bf16.mxu1 %v2794_v60 }
 0xf94   :  { %v750_v62 = vpop.permute.xlu1 %749 }
 0xf95   :  { %v752_v63 = vadd.f32 %v750_v62, %v742_v61  ;;  %v1081_v61 = vld [vmem:[%s3367_s1 + $0x60] sm:$0xff] }
 0xf96   :  { %v2802_v62 = vpack.c.bf16 %v1081_v61, %v1080_v59 }
 0xf97   :  { %2872 = vtanh.f32 %v752_v63  ;;  %v851_v22 = vrot.slane %v752_v63, 6 }
 0xfa1   :  { %v2873_v0 = vpop.eup %2872 }
 0xfa2   :  { %755 = vrot.lane.b32.xlu0 %v2873_v0, %s2989_s22 }
0x1014   :  { %v756_v1 = vpop.permute.xlu0 %755 }
0x1015   :  { %v3122_v2 = vmul.f32 %v756_v1, %v737_v58 }
0x1017   :  { %v766_v4 = vrot.slane %v3122_v2, 2  ;;  %v759_v56 = vmax.f32 %v3122_v2, 0.0 }
0x1019   :  { %767 = vrot.lane.b32.xlu1 %v766_v4, %s2990_s23 }
0x108b   :  { %v768_v8 = vpop.permute.xlu1 %767 }
0x108c   :  { %2658 = vmatmul.mubr.msk.f32.vlgmr.msra.gmra.mrb[6].mxu1 %vm108_vm3, %v768_v8 }
0x108d   :  { %2797 = vmatpush3.bf16.msra.mxu1 %v2794_v60 }
0x108e   :  { %2804 = vmatprep.subr.bf16.mxu1 %v2984_v5 }
0x115f   :  { %v837_v9 = vpop.f32.mrb[6].mxu1 }
0x1160   :  { %v842_v11 = vrot.slane %v837_v9, 4  ;;  %v2659_v13 = vpop.f32.mrb[7].mxu1 }
0x1162   :  { %v844_v14 = vadd.f32 %v842_v11, %v3050_v10 }
0x1164   :  { %2874 = vtanh.f32 %v844_v14  ;;  %v845_v16 = vmul.f32 0.5, %v844_v14 }
0x1166   :  { %2876 = vtanh.f32 %v845_v16  ;;  %v3188_v16 = vld [vmem:[%s3367_s1 + $0x80] ss:$0 sm:$0xff] }
0x116e   :  { %v2875_v15 = vpop.eup %2874 }
0x116f   :  { %855 = vrot.lane.b32.xlu0 %v2875_v15, %s2987_s20 }
0x1170   :  { %v2877_v17 = vpop.eup %2876 }
0x1171   :  { %v847_v18 = vadd.f32 1.0, %v2877_v17  ;;  %v2503_v17 = vld [vmem:[%s3367_s1 + $0x88] ss:$0 sm:$0xff] }
0x1173   :  { %v848_v19 = vmul.f32 0.5, %v847_v18 }
0x1175   :  { %v853_v23 = vmul.f32 %v851_v22, %v848_v19 }
0x11e1   :  { %v856_v20 = vpop.permute.xlu0 %855 }
0x11e2   :  { %v858_v21 = vmul.f32 %v856_v20, %v848_v19 }
0x11e4   :  { %860 = vrot.lane.b32.xlu1 %v858_v21, %s2988_s21 }
0x1256   :  { %v861_v24 = vpop.permute.xlu1 %860 }
0x1257   :  { %v863_v25 = vadd.f32 %v861_v24, %v853_v23  ;;  %v3199_v24 = vld [vmem:[%s3367_s1 + $0x78] ss:$0 sm:$0xff] }
0x1259   :  { %2878 = vtanh.f32 %v863_v25  ;;  %v962_v46 = vrot.slane %v863_v25, 6 }
0x1263   :  { %v2879_v26 = vpop.eup %2878 }
0x1264   :  { %866 = vrot.lane.b32.xlu0 %v2879_v26, %s2989_s22 }
0x12d6   :  { %v867_v12 = vpop.permute.xlu0 %866 }
0x12d7   :  { %v869_v29 = vmul.f32 %v867_v12, %v848_v19 }
0x12d9   :  { %v877_v30 = vrot.slane %v869_v29, 4  ;;  %v870_v45 = vmax.f32 %v869_v29, 0.0  ;;  %v1084_v29 = vld [vmem:[%s3367_s1 + $0x20] sm:$0xff] }
0x12db   :  { %878 = vrot.lane.b32.xlu1 %v877_v30, %s2990_s23  ;;  %v1085_v30 = vld [vmem:[%s3367_s1 + $0x28] sm:$0xff] }
0x134d   :  { %v879_v31 = vpop.permute.xlu1 %878 }
0x134e   :  { %2665 = vmatmul.mubr.msk.f32.vlgmr.msra.gmra.mrb[8].mxu0 %vm108_vm3, %v879_v31  ;;  %v1086_v31 = vld [vmem:[%s3367_s1 + $0x30] sm:$0xff] }
0x134f   :  { %2682 = vmatprep.mubr.msk.f32.mxu0 %vm2985_vm2, %v2986_v7 }
0x1421   :  { %v948_v32 = vpop.f32.mrb[8].mxu0 }
0x1422   :  { %v953_v33 = vrot.slane %v948_v32, 2  ;;  %v2666_v34 = vpop.f32.mrb[9].mxu0  ;;  %v2805_v32 = vpack.c.bf16 %v1085_v30, %v1084_v29 }
0x1424   :  { %v955_v35 = vadd.f32 %v953_v33, %v3050_v10  ;;  %v649_v10 = vmax.f32 %v3109_v48, 0.0  ;;  %v316_v48 = vmax.f32 %v3071_v47, 0.0  ;;  %v1079_v47 = vld [vmem:[%s3367_s1 + $0x50] sm:$0xff]  ;;  %v1087_v33 = vld [vmem:[%s3367_s1 + $0x38] sm:$0xff] }
0x1425   :  { %v2799_v58 = vpack.c.bf16 %v1079_v47, %v1078_v57  ;;  %v2808_v34 = vpack.c.bf16 %v1087_v33, %v1086_v31 }
0x1426   :  { %2880 = vtanh.f32 %v955_v35  ;;  %v956_v37 = vmul.f32 0.5, %v955_v35 }
0x1427   :  { %2800 = vmatpush3.bf16.msra.mxu0 %v2799_v58 }
0x1428   :  { %2882 = vtanh.f32 %v956_v37  ;;  %2801 = vmatprep.subr.bf16.mxu0 %v2984_v5 }
0x142b   :  { %2803 = vmatpush3.bf16.msra.mxu0 %v2802_v62 }
0x142c   :  { %2810 = vmatprep.subr.bf16.mxu0 %v2984_v5 }
0x142e   :  { %2683 = vmatmul.mubr.f32.vlgmr.msra.gmra.mrb[10].mxu0 %v2986_v7 }
0x142f   :  { %2812 = vmatpush3.bf16.msra.mxu0 %v2799_v58  ;;  %2704 = vmatprep.mubr.msk.f32.mxu0 %vm2985_vm2, %v2986_v7 }
0x1430   :  { %v2881_v36 = vpop.eup %2880  ;;  %2813 = vmatprep.subr.bf16.mxu0 %v2984_v5 }
0x1431   :  { %966 = vrot.lane.b32.xlu0 %v2881_v36, %s2987_s20 }
0x1432   :  { %v2883_v38 = vpop.eup %2882 }
0x1433   :  { %v958_v39 = vadd.f32 1.0, %v2883_v38  ;;  %2815 = vmatpush3.bf16.msra.mxu0 %v2802_v62 }
0x1435   :  { %v959_v40 = vmul.f32 0.5, %v958_v39 }
0x1437   :  { %v964_v49 = vmul.f32 %v962_v46, %v959_v40 }
0x14a3   :  { %v967_v41 = vpop.permute.xlu0 %966 }
0x14a4   :  { %v969_v42 = vmul.f32 %v967_v41, %v959_v40 }
0x14a6   :  { %971 = vrot.lane.b32.xlu1 %v969_v42, %s2988_s21 }
0x14aa   :  { %207 = vrot.lane.b32.xlu1 %v205_v43, %s2990_s23 }
0x14ae   :  { %430 = vrot.lane.b32.xlu1 %v428_v44, %s2990_s23 }
0x14b2   :  { %651 = vrot.lane.b32.xlu1 %v649_v10, %s2990_s23 }
0x14b6   :  { %872 = vrot.lane.b32.xlu1 %v870_v45, %s2990_s23 }
0x1501   :  { %v1162_v14 = vpop.f32.mrb[10].mxu0 }
0x1502   :  { %v2684_v15 = vpop.f32.mrb[11].mxu0  ;;  %v1163_v19 = vadd.f32 %v3188_v16, %v1162_v14 }
0x1518   :  { %v972_v50 = vpop.permute.xlu1 %971 }
0x1519   :  { %v974_v51 = vadd.f32 %v972_v50, %v964_v49 }
0x151b   :  { %2884 = vtanh.f32 %v974_v51 }
0x151c   :  { %v208_v28 = vpop.permute.xlu1 %207 }
0x151d   :  { %211 = vst.msk [vmem:[#allocation2] sm:$0x3] %vm210_vm4, %v208_v28 }
0x1520   :  { %v431_v52 = vpop.permute.xlu1 %430 }
0x1521   :  { %434 = vst.msk [vmem:[#allocation2] sm:$0x30] %vm433_vm5, %v431_v52 }
0x1524   :  { %v652_v3 = vpop.permute.xlu1 %651 }
0x1525   :  { %v2885_v53 = vpop.eup %2884  ;;  %654 = vst.msk [vmem:[#allocation2 + $0x8] sm:$0x3] %vm210_vm4, %v652_v3 }
0x1526   :  { %977 = vrot.lane.b32.xlu0 %v2885_v53, %s2989_s22 }
0x1528   :  { %v873_v54 = vpop.permute.xlu1 %872 }
0x1529   :  { %875 = vst.msk [vmem:[#allocation2 + $0x8] sm:$0x30] %vm433_vm5, %v873_v54 }
0x152a   :  { %318 = vrot.lane.b32.xlu0 %v316_v48, %s2990_s23  ;;  %v3226_v48 = vld [vmem:[%s3367_s1 + $0x40] ss:$0 sm:$0xff] }
0x152e   :  { %542 = vrot.lane.b32.xlu0 %v540_v55, %s2990_s23 }
0x1532   :  { %761 = vrot.lane.b32.xlu0 %v759_v56, %s2990_s23 }
0x1598   :  { %v978_v63 = vpop.permute.xlu0 %977 }
0x1599   :  { %v980_v0 = vmul.f32 %v978_v63, %v959_v40 }
0x159b   :  { %v981_v1 = vmax.f32 %v980_v0, 0.0 }
0x159c   :  { %v319_v2 = vpop.permute.xlu0 %318 }
0x159d   :  { %322 = vst.msk [vmem:[#allocation2] sm:$0xc] %vm321_vm6, %v319_v2  ;;  %983 = vrot.lane.b32.xlu0 %v981_v1, %s2990_s23 }
0x15a0   :  { %v543_v4 = vpop.permute.xlu0 %542 }
0x15a1   :  { %546 = vst.msk [vmem:[#allocation2] sm:$0xc0] %vm545_vm7, %v543_v4 }
0x15a4   :  { %v762_v8 = vpop.permute.xlu0 %761 }
0x15a5   :  { %764 = vst.msk [vmem:[#allocation2 + $0x8] sm:$0xc] %vm321_vm6, %v762_v8 }
0x160f   :  { %v984_v9 = vpop.permute.xlu0 %983 }
0x1610   :  { %986 = vst.msk [vmem:[#allocation2 + $0x8] sm:$0xc0] %vm545_vm7, %v984_v9 }
0x1617   :  { %v987_v11 = vld [vmem:[#allocation2] ss:$2 sm:$0xff]  ;;  %v3178_v13 = vld [vmem:[#allocation2 + $0x1] ss:$2 sm:$0xff] }
0x1618   :  { %2671 = vmatprep.mubr.msk.f32.mxu1 %vm108_vm3, %v987_v11 }
0x1619   :  { %2672 = vmatmul.mubr.msk.f32.vlgmr.msra.gmra.mrb[8].mxu1 %vm108_vm3, %v3178_v13 }
0x161a   :  { %2693 = vmatprep.mubr.msk.f32.mxu1 %vm2985_vm2, %v2986_v7  ;;  %2806 = vmatpush3.bf16.msra.mxu1 %v2805_v32 }
0x161b   :  { %2807 = vmatprep.subr.bf16.mxu1 %v2984_v5 }
0x161e   :  { %2809 = vmatpush3.bf16.msra.mxu1 %v2808_v34 }
0x161f   :  { %2816 = vmatprep.subr.bf16.mxu1 %v2984_v5 }
0x16ec   :  { %v2673_v18 = vpop.f32.mrb[8].mxu1 }
0x16ed   :  { %v3194_v20 = vadd.f32 %v2673_v18, %v2503_v17  ;;  %v1069_v21 = vpop.f32.mrb[9].mxu1 }
0x16ee   :  { %v1070_v22 = vadd.f32 %v2503_v17, %v1069_v21 }
0x16f0   :  { %v1166_v23 = vadd.f32 %v1163_v19, %v1070_v22 }
0x16f2   :  { %2886 = vtanh.f32 %v1166_v23 }
0x16fc   :  { %v2887_v25 = vpop.eup %2886 }
0x16fd   :  { %v1172_v26 = vmul.f32 %v2887_v25, %v3199_v24 }
0x16ff   :  { %v1173_v12 = vsel %vm108_vm3, %v1172_v26, 0.0 }
0x1700   :  { %1174 = vadd.xlane.f32.xlu1 %v1173_v12 }
0x178d   :  { %v1175_v35 = vpop.xlane.xlu1 %1174 }
0x178e   :  { %v1176_v36 = vrot.slane %v1175_v35, 4 }
0x1790   :  { %v1177_v37 = vmax.f32 %v1175_v35, %v1176_v36 }
0x1792   :  { %v1178_v38 = vrot.slane %v1177_v37, 2 }
0x1794   :  { %v1179_v39 = vmax.f32 %v1177_v37, %v1178_v38 }
0x1796   :  { %v1180_v40 = vrot.slane %v1179_v39, 1 }
0x1798   :  { %v1181_v41 = vmax.f32 %v1179_v39, %v1180_v40 }
0x179a   :  { %v1182_v42 = vsub.f32 %v1175_v35, %v1181_v41 }
0x179c   :  { %v1183_v43 = vmul.f32 1.442695, %v1182_v42 }
0x179e   :  { %2888 = vpow2.f32 %v1183_v43 }
0x17a8   :  { %v2889_v44 = vpop.eup %2888 }
0x17a9   :  { %v1185_v10 = vrot.slane %v2889_v44, 4 }
0x17ab   :  { %v1186_v45 = vadd.f32 %v2889_v44, %v1185_v10 }
0x17ad   :  { %v1187_v46 = vrot.slane %v1186_v45, 2 }
0x17af   :  { %v1188_v49 = vadd.f32 %v1187_v46, %v1186_v45 }
0x17b1   :  { %v1189_v50 = vrot.slane %v1188_v49, 1 }
0x17b3   :  { %v1190_v51 = vadd.f32 %v1189_v50, %v1188_v49 }
0x17b5   :  { %2890 = vrcp.f32 %v1190_v51 }
0x17bf   :  { %v2891_v28 = vpop.eup %2890 }
0x17c0   :  { %v1192_v52 = vmul.f32 %v2891_v28, %v2889_v44 }
0x17c2   :  { %v1193_v3 = vmul.f32 %v1192_v52, %v987_v11  ;;  %v1495_v52 = vld [vmem:[%s3367_s1 + $0x90] sm:$0xff] }
0x17c4   :  { %v1194_v53 = vsel %vm108_vm3, %v1193_v3, 0.0  ;;  %v1496_v3 = vld [vmem:[%s3367_s1 + $0x98] sm:$0xff] }
0x17c5   :  { %2694 = vmatmul.mubr.msk.f32.vlgmr.msra.gmra.mrb[10].mxu1 %vm1093_vm8, %v1194_v53  ;;  %v2822_v53 = vpack.c.bf16 %v1496_v3, %v1495_v52 }
0x17c6   :  { %2818 = vmatpush3.bf16.msra.mxu1 %v2805_v32  ;;  %2715 = vmatprep.mubr.msk.f32.mxu1 %vm2985_vm2, %v2986_v7 }
0x17c7   :  { %2819 = vmatprep.subr.bf16.mxu1 %v2984_v5  ;;  %2823 = vmatprep.subr.bf16.mxu0 %v2822_v53 }
0x17ca   :  { %2821 = vmatpush3.bf16.msra.mxu1 %v2808_v34 }
0x17cb   :  { %2725 = vmatprep.subr.mxu1 %v2986_v7 }
0x1898   :  { %v1268_v54 = vpop.f32.mrb[10].mxu1 }
0x1899   :  { %v1269_v55 = vadd.f32 %v3226_v48, %v1268_v54  ;;  %v2695_v56 = vpop.f32.mrb[11].mxu1  ;;  %v3260_v54 = vld [vmem:[%s3367_s1 + $0xa0] sm:$0x3f] }
0x189b   :  { %2892 = vtanh.f32 %v1269_v55  ;;  %v1272_v47 = vmul.f32 0.5, %v1269_v55 }
0x189d   :  { %2894 = vtanh.f32 %v1272_v47 }
0x18a5   :  { %v2893_v57 = vpop.eup %2892 }
0x18a6   :  { %1279 = vrot.lane.b32.xlu0 %v2893_v57, %s2987_s20 }
0x18a7   :  { %v2895_v58 = vpop.eup %2894 }
0x18a8   :  { %v1274_v5 = vadd.f32 1.0, %v2895_v58 }
0x18aa   :  { %v1275_v6 = vmul.f32 0.5, %v1274_v5  ;;  %v2512_v5 = vld [vmem:[%s3367_s1 + $0xa8] ss:$0 sm:$0xff] }
0x18ac   :  { %v1277_v60 = vmul.f32 0.0, %v1275_v6 }
0x1918   :  { %v1280_v27 = vpop.permute.xlu0 %1279 }
0x1919   :  { %v1282_v59 = vmul.f32 %v1280_v27, %v1275_v6 }
0x191b   :  { %1284 = vrot.lane.b32.xlu0 %v1282_v59, %s2988_s21 }
0x198d   :  { %v1285_v61 = vpop.permute.xlu0 %1284 }
0x198e   :  { %v1287_v62 = vadd.f32 %v1285_v61, %v1277_v60 }
0x1990   :  { %2896 = vtanh.f32 %v1287_v62 }
0x199a   :  { %v2897_v63 = vpop.eup %2896 }
0x199b   :  { %1290 = vrot.lane.b32.xlu0 %v2897_v63, %s2989_s22 }
0x1a0d   :  { %v1291_v0 = vpop.permute.xlu0 %1290 }
0x1a0e   :  { %v1293_v1 = vmul.f32 %v1291_v0, %v1275_v6 }
0x1a10   :  { %1396 = vrot.lane.b32.xlu1 %v1293_v1, %s2987_s20  ;;  %1295 = vrot.lane.b32.xlu0 %v1293_v1, %s2990_s23 }
0x1a82   :  { %v1296_v2 = vpop.permute.xlu0 %1295  ;;  %v1397_v38 = vpop.permute.xlu1 %1396 }
0x1a83   :  { %v1298_v4 = vsel %vm108_vm3, %v1296_v2, %v1287_v62 }
0x1a84   :  { %2705 = vmatmul.mubr.msk.f32.vlgmr.msra.gmra.mrb[12].mxu0 %vm1093_vm8, %v1298_v4 }
0x1a85   :  { %2722 = vmatprep.mubr.msk.f32.mxu0 %vm108_vm3, %v1296_v2  ;;  %2825 = vmatpush3.bf16.msra.mxu0 %v2822_v53 }
0x1a86   :  { %2730 = vmatprep.subr.mxu0 %v2986_v7 }
0x1b57   :  { %v1368_v8 = vpop.f32.mrb[12].mxu0 }
0x1b58   :  { %v1369_v9 = vadd.f32 %v3188_v16, %v1368_v8  ;;  %v2706_v11 = vpop.f32.mrb[13].mxu0 }
0x1b5a   :  { %v1372_v14 = vadd.f32 %v1369_v9, %v3194_v20 }
0x1b5c   :  { %2898 = vtanh.f32 %v1372_v14 }
0x1b66   :  { %v2899_v15 = vpop.eup %2898 }
0x1b67   :  { %v1374_v17 = vmul.f32 %v2899_v15, %v3199_v24 }
0x1b69   :  { %v1375_v18 = vsel %vm108_vm3, %v1374_v17, 0.0 }
0x1b6a   :  { %1376 = vadd.xlane.f32.xlu0 %v1375_v18 }
0x1bf7   :  { %v1377_v19 = vpop.xlane.xlu0 %1376 }
0x1bf8   :  { %v1378_v21 = vrot.slane %v1377_v19, 4 }
0x1bfa   :  { %v1379_v22 = vmax.f32 %v1377_v19, %v1378_v21 }
0x1bfc   :  { %v1380_v23 = vrot.slane %v1379_v22, 2 }
0x1bfe   :  { %v1381_v25 = vmax.f32 %v1379_v22, %v1380_v23 }
0x1c00   :  { %v1382_v26 = vrot.slane %v1381_v25, 1 }
0x1c02   :  { %v1383_v12 = vmax.f32 %v1381_v25, %v1382_v26 }
0x1c04   :  { %v1384_v29 = vsub.f32 %v1377_v19, %v1383_v12 }
0x1c06   :  { %v1385_v30 = vmul.f32 1.442695, %v1384_v29 }
0x1c08   :  { %2900 = vpow2.f32 %v1385_v30 }
0x1c12   :  { %v2901_v16 = vpop.eup %2900 }
0x1c13   :  { %v1387_v31 = vrot.slane %v2901_v16, 4 }
0x1c15   :  { %v1388_v20 = vadd.f32 %v2901_v16, %v1387_v31 }
0x1c17   :  { %v1389_v32 = vrot.slane %v1388_v20, 2 }
0x1c19   :  { %v1390_v33 = vadd.f32 %v1389_v32, %v1388_v20 }
0x1c1b   :  { %v1391_v34 = vrot.slane %v1390_v33, 1 }
0x1c1d   :  { %v1392_v24 = vadd.f32 %v1391_v34, %v1390_v33 }
0x1c1f   :  { %2902 = vrcp.f32 %v1392_v24 }
0x1c29   :  { %v2903_v35 = vpop.eup %2902 }
0x1c2a   :  { %v1394_v36 = vmul.f32 %v2903_v35, %v2901_v16 }
0x1c2c   :  { %v1395_v37 = vmul.f32 %v1394_v36, %v3178_v13 }
0x1c2e   :  { %v1399_v39 = vsel %vm108_vm3, %v1395_v37, %v1397_v38 }
0x1c2f   :  { %2716 = vmatmul.mubr.msk.f32.vlgmr.msra.gmra.mrb[12].mxu1 %vm1093_vm8, %v1399_v39 }
0x1c30   :  { %2727 = vmatprep.mubr.msk.f32.mxu1 %vm2985_vm2, %v2986_v7  ;;  %2726 = vmatpush3.msk.msra.mxu1 %vm27_vm0, %v3260_v54 }
0x1c31   :  { %2735 = vmatprep.subr.mxu1 %v2986_v7 }
0x1c33   :  { %2728 = vmatmul.mubr.f32.vlgmr.msra.gmra.mrb[14].mxu1 %v2986_v7 }
0x1c34   :  { %2736 = vmatpush3.msk.msra.mxu1 %vm27_vm0, %v3260_v54  ;;  %2737 = vmatprep.mubr.msk.f32.mxu1 %vm2985_vm2, %v2986_v7 }
0x1c35   :  { %2745 = vmatprep.subr.mxu1 %v2986_v7 }
0x1d02   :  { %v1469_v40 = vpop.f32.mrb[12].mxu1 }
0x1d03   :  { %v1470_v41 = vadd.f32 %v3226_v48, %v1469_v40  ;;  %v2717_v42 = vpop.f32.mrb[13].mxu1 }
0x1d05   :  { %2904 = vtanh.f32 %v1470_v41  ;;  %v1473_v44 = vmul.f32 0.5, %v1470_v41 }
0x1d06   :  { %v1660_v47 = vpop.f32.mrb[14].mxu1 }
0x1d07   :  { %2906 = vtanh.f32 %v1473_v44  ;;  %v2729_v58 = vpop.f32.mrb[15].mxu1 }
0x1d0f   :  { %v2905_v43 = vpop.eup %2904 }
0x1d10   :  { %1480 = vrot.lane.b32.xlu0 %v2905_v43, %s2987_s20 }
0x1d11   :  { %v2907_v10 = vpop.eup %2906 }
0x1d12   :  { %v1475_v13 = vadd.f32 1.0, %v2907_v10 }
0x1d14   :  { %v1476_v45 = vmul.f32 0.5, %v1475_v13 }
0x1d16   :  { %v1478_v50 = vmul.f32 %v1476_v45, %v1287_v62 }
0x1d82   :  { %v1481_v46 = vpop.permute.xlu0 %1480 }
0x1d83   :  { %v1483_v49 = vmul.f32 %v1481_v46, %v1476_v45 }
0x1d85   :  { %1485 = vrot.lane.b32.xlu1 %v1483_v49, %s2988_s21 }
0x1df7   :  { %v1486_v51 = vpop.permute.xlu1 %1485 }
0x1df8   :  { %v1488_v28 = vadd.f32 %v1486_v51, %v1478_v50 }
0x1dfa   :  { %2908 = vtanh.f32 %v1488_v28 }
0x1e04   :  { %v2909_v48 = vpop.eup %2908 }
0x1e05   :  { %1491 = vrot.lane.b32.xlu1 %v2909_v48, %s2989_s22 }
0x1e77   :  { %v1492_v55 = vpop.permute.xlu1 %1491 }
0x1e78   :  { %v1494_v56 = vmul.f32 %v1492_v55, %v1476_v45 }
0x1e7a   :  { %1503 = vrot.lane.b32.xlu1 %v1494_v56, %s2990_s23  ;;  %s2991_s23 = smov 116  }
0x1eec   :  { %v1504_v57 = vpop.permute.xlu1 %1503 }
0x1eed   :  { %2723 = vmatmul.mubr.msk.f32.vlgmr.msra.gmra.mrb[14].mxu0 %vm108_vm3, %v1504_v57 }
0x1eee   :  { %2731 = vmatpush3.msk.msra.mxu0 %vm27_vm0, %v3260_v54  ;;  %2732 = vmatprep.mubr.msk.f32.mxu0 %vm2985_vm2, %v2986_v7 }
0x1eef   :  { %2740 = vmatprep.subr.mxu0 %v2986_v7 }
0x1fc0   :  { %v2724_v6 = vpop.f32.mrb[14].mxu0 }
0x1fc1   :  { %v1581_v27 = vadd.f32 %v2724_v6, %v2512_v5  ;;  %v1575_v59 = vpop.f32.mrb[15].mxu0 }
0x1fc2   :  { %v1576_v60 = vadd.f32 %v2512_v5, %v1575_v59 }
0x1fc3   :  { %1586 = vst.msk [vmem:[#allocation3 + $0x8] sm:$0xff] %vm1584_vm9, %v1581_v27 }
0x1fc4   :  { %1585 = vst.msk [vmem:[#allocation3] sm:$0xff] %vm1584_vm9, %v1576_v60 }
0x1fcb   :  { %v1588_v61 = vld [vmem:[#allocation3] ss:$8 sm:$0x3]  ;;  %v1688_v22 = vld [vmem:[#allocation3 + $0x1] ss:$8 sm:$0x3] }
0x1fcc   :  { %v1664_v62 = vadd.f32 %v1660_v47, %v1588_v61  ;;  %v1788_v39 = vld [vmem:[#allocation3 + $0x2] ss:$8 sm:$0x3]  ;;  %v1888_v55 = vld [vmem:[#allocation3 + $0x3] ss:$8 sm:$0x3] }
0x1fce   :  { %2910 = vtanh.f32 %v1664_v62  ;;  %v1665_v0 = vmul.f32 0.5, %v1664_v62 }
0x1fd0   :  { %2912 = vtanh.f32 %v1665_v0 }
0x1fd8   :  { %v2911_v63 = vpop.eup %2910 }
0x1fd9   :  { %1672 = vrot.lane.b32.xlu1 %v2911_v63, %s2991_s23 }
0x1fda   :  { %v2913_v1 = vpop.eup %2912 }
0x1fdb   :  { %v1667_v2 = vadd.f32 1.0, %v2913_v1 }
0x1fdd   :  { %v1668_v4 = vmul.f32 0.5, %v1667_v2 }
0x1fdf   :  { %v1670_v11 = vmul.f32 0.0, %v1668_v4 }
0x204b   :  { %v1673_v8 = vpop.permute.xlu1 %1672 }
0x204c   :  { %v1675_v9 = vmul.f32 %v1673_v8, %v1668_v4 }
0x204e   :  { %1677 = vrot.lane.b32.xlu1 %v1675_v9, %s2992_s4  ;;  %v1988_v9 = vld [vmem:[#allocation3 + $0x4] ss:$8 sm:$0x3] }
0x20c0   :  { %v1678_v14 = vpop.permute.xlu1 %1677 }
0x20c1   :  { %v1680_v15 = vadd.f32 %v1678_v14, %v1670_v11 }
0x20c3   :  { %2914 = vtanh.f32 %v1680_v15 }
0x20cd   :  { %v2915_v17 = vpop.eup %2914 }
0x20ce   :  { %1683 = vrot.lane.b32.xlu0 %v2915_v17, %s2993_s5 }
0x2140   :  { %v1684_v18 = vpop.permute.xlu0 %1683 }
0x2141   :  { %v1686_v19 = vmul.f32 %v1684_v18, %v1668_v4 }
0x2143   :  { %1690 = vrot.lane.b32.xlu1 %v1686_v19, %s2994_s6 }
0x21b5   :  { %v1691_v21 = vpop.permute.xlu1 %1690 }
0x21b6   :  { %2733 = vmatmul.mubr.msk.f32.vlgmr.msra.gmra.mrb[16].mxu0 %vm20_vm1, %v1691_v21 }
0x21b7   :  { %2741 = vmatpush3.msk.msra.mxu0 %vm27_vm0, %v3260_v54  ;;  %2742 = vmatprep.mubr.msk.f32.mxu0 %vm2985_vm2, %v2986_v7 }
0x21b8   :  { %2750 = vmatprep.subr.mxu0 %v2986_v7 }
0x2289   :  { %v1760_v23 = vpop.f32.mrb[16].mxu0 }
0x228a   :  { %v1764_v25 = vadd.f32 %v1760_v23, %v1688_v22  ;;  %v2734_v26 = vpop.f32.mrb[17].mxu0 }
0x228c   :  { %2916 = vtanh.f32 %v1764_v25  ;;  %v1765_v29 = vmul.f32 0.5, %v1764_v25 }
0x228e   :  { %2918 = vtanh.f32 %v1765_v29 }
0x2296   :  { %v2917_v12 = vpop.eup %2916 }
0x2297   :  { %1772 = vrot.lane.b32.xlu0 %v2917_v12, %s2991_s23 }
0x2298   :  { %v2919_v30 = vpop.eup %2918 }
0x2299   :  { %v1767_v16 = vadd.f32 1.0, %v2919_v30 }
0x229b   :  { %v1768_v31 = vmul.f32 0.5, %v1767_v16 }
0x229d   :  { %v1770_v33 = vmul.f32 %v1768_v31, %v1680_v15 }
0x2309   :  { %v1773_v20 = vpop.permute.xlu0 %1772 }
0x230a   :  { %v1775_v32 = vmul.f32 %v1773_v20, %v1768_v31 }
0x230c   :  { %1777 = vrot.lane.b32.xlu1 %v1775_v32, %s2992_s4  ;;  %v2088_v32 = vld [vmem:[#allocation3 + $0x5] ss:$8 sm:$0x3] }
0x237e   :  { %v1778_v34 = vpop.permute.xlu1 %1777 }
0x237f   :  { %v1780_v24 = vadd.f32 %v1778_v34, %v1770_v33 }
0x2381   :  { %2920 = vtanh.f32 %v1780_v24 }
0x238b   :  { %v2921_v35 = vpop.eup %2920 }
0x238c   :  { %1783 = vrot.lane.b32.xlu0 %v2921_v35, %s2993_s5 }
0x23fe   :  { %v1784_v36 = vpop.permute.xlu0 %1783 }
0x23ff   :  { %v1786_v37 = vmul.f32 %v1784_v36, %v1768_v31 }
0x2401   :  { %1790 = vrot.lane.b32.xlu1 %v1786_v37, %s2994_s6 }
0x2473   :  { %v1791_v38 = vpop.permute.xlu1 %1790 }
0x2474   :  { %2738 = vmatmul.mubr.msk.f32.vlgmr.msra.gmra.mrb[16].mxu1 %vm20_vm1, %v1791_v38 }
0x2475   :  { %2746 = vmatpush3.msk.msra.mxu1 %vm27_vm0, %v3260_v54  ;;  %2747 = vmatprep.mubr.msk.f32.mxu1 %vm2985_vm2, %v2986_v7 }
0x2476   :  { %2755 = vmatprep.subr.mxu1 %v2986_v7 }
0x2547   :  { %v1860_v40 = vpop.f32.mrb[16].mxu1 }
0x2548   :  { %v1864_v41 = vadd.f32 %v1860_v40, %v1788_v39  ;;  %v2739_v42 = vpop.f32.mrb[17].mxu1 }
0x254a   :  { %2922 = vtanh.f32 %v1864_v41  ;;  %v1865_v44 = vmul.f32 0.5, %v1864_v41 }
0x254c   :  { %2924 = vtanh.f32 %v1865_v44 }
0x2554   :  { %v2923_v43 = vpop.eup %2922 }
0x2555   :  { %1872 = vrot.lane.b32.xlu0 %v2923_v43, %s2991_s23 }
0x2556   :  { %v2925_v10 = vpop.eup %2924 }
0x2557   :  { %v1867_v13 = vadd.f32 1.0, %v2925_v10 }
0x2559   :  { %v1868_v45 = vmul.f32 0.5, %v1867_v13 }
0x255b   :  { %v1870_v50 = vmul.f32 %v1868_v45, %v1780_v24 }
0x25c7   :  { %v1873_v46 = vpop.permute.xlu0 %1872 }
0x25c8   :  { %v1875_v49 = vmul.f32 %v1873_v46, %v1868_v45  ;;  %v2188_v46 = vld [vmem:[#allocation3 + $0x6] ss:$8 sm:$0x3] }
0x25ca   :  { %1877 = vrot.lane.b32.xlu1 %v1875_v49, %s2992_s4 }
0x263c   :  { %v1878_v51 = vpop.permute.xlu1 %1877 }
0x263d   :  { %v1880_v28 = vadd.f32 %v1878_v51, %v1870_v50 }
0x263f   :  { %2926 = vtanh.f32 %v1880_v28 }
0x2649   :  { %v2927_v52 = vpop.eup %2926 }
0x264a   :  { %1883 = vrot.lane.b32.xlu0 %v2927_v52, %s2993_s5 }
0x26bc   :  { %v1884_v3 = vpop.permute.xlu0 %1883 }
0x26bd   :  { %v1886_v53 = vmul.f32 %v1884_v3, %v1868_v45 }
0x26bf   :  { %1890 = vrot.lane.b32.xlu1 %v1886_v53, %s2994_s6 }
0x2731   :  { %v1891_v48 = vpop.permute.xlu1 %1890 }
0x2732   :  { %2743 = vmatmul.mubr.msk.f32.vlgmr.msra.gmra.mrb[18].mxu0 %vm20_vm1, %v1891_v48 }
0x2733   :  { %2751 = vmatpush3.msk.msra.mxu0 %vm27_vm0, %v3260_v54  ;;  %2752 = vmatprep.mubr.msk.f32.mxu0 %vm2985_vm2, %v2986_v7 }
0x2734   :  { %2760 = vmatprep.subr.mxu0 %v2986_v7 }
0x2805   :  { %v1960_v56 = vpop.f32.mrb[18].mxu0 }
0x2806   :  { %v1964_v57 = vadd.f32 %v1960_v56, %v1888_v55  ;;  %v2744_v47 = vpop.f32.mrb[19].mxu0 }
0x2808   :  { %2928 = vtanh.f32 %v1964_v57  ;;  %v1965_v5 = vmul.f32 0.5, %v1964_v57 }
0x280a   :  { %2930 = vtanh.f32 %v1965_v5 }
0x2812   :  { %v2929_v58 = vpop.eup %2928 }
0x2813   :  { %1972 = vrot.lane.b32.xlu0 %v2929_v58, %s2991_s23 }
0x2814   :  { %v2931_v6 = vpop.eup %2930 }
0x2815   :  { %v1967_v27 = vadd.f32 1.0, %v2931_v6 }
0x2817   :  { %v1968_v59 = vmul.f32 0.5, %v1967_v27 }
0x2819   :  { %v1970_v62 = vmul.f32 %v1968_v59, %v1880_v28 }
0x2885   :  { %v1973_v60 = vpop.permute.xlu0 %1972 }
0x2886   :  { %v1975_v61 = vmul.f32 %v1973_v60, %v1968_v59 }
0x2888   :  { %1977 = vrot.lane.b32.xlu1 %v1975_v61, %s2992_s4 }
0x28fa   :  { %v1978_v63 = vpop.permute.xlu1 %1977 }
0x28fb   :  { %v1980_v0 = vadd.f32 %v1978_v63, %v1970_v62 }
0x28fd   :  { %2932 = vtanh.f32 %v1980_v0 }
0x2907   :  { %v2933_v1 = vpop.eup %2932 }
0x2908   :  { %1983 = vrot.lane.b32.xlu0 %v2933_v1, %s2993_s5 }
0x297a   :  { %v1984_v2 = vpop.permute.xlu0 %1983 }
0x297b   :  { %v1986_v4 = vmul.f32 %v1984_v2, %v1968_v59  ;;  %v2288_v59 = vld [vmem:[#allocation3 + $0x7] ss:$8 sm:$0x3] }
0x297d   :  { %1990 = vrot.lane.b32.xlu1 %v1986_v4, %s2994_s6 }
0x29ef   :  { %v1991_v8 = vpop.permute.xlu1 %1990 }
0x29f0   :  { %2748 = vmatmul.mubr.msk.f32.vlgmr.msra.gmra.mrb[18].mxu1 %vm20_vm1, %v1991_v8 }
0x29f1   :  { %2756 = vmatpush3.msk.msra.mxu1 %vm27_vm0, %v3260_v54  ;;  %2757 = vmatprep.mubr.msk.f32.mxu1 %vm2985_vm2, %v2986_v7 }
0x29f2   :  { %2765 = vmatprep.subr.mxu1 %v2986_v7 }
0x2ac3   :  { %v2060_v11 = vpop.f32.mrb[18].mxu1 }
0x2ac4   :  { %v2064_v14 = vadd.f32 %v2060_v11, %v1988_v9  ;;  %v2749_v15 = vpop.f32.mrb[19].mxu1 }
0x2ac6   :  { %2934 = vtanh.f32 %v2064_v14  ;;  %v2065_v18 = vmul.f32 0.5, %v2064_v14 }
0x2ac8   :  { %2936 = vtanh.f32 %v2065_v18 }
0x2ad0   :  { %v2935_v17 = vpop.eup %2934 }
0x2ad1   :  { %2072 = vrot.lane.b32.xlu0 %v2935_v17, %s2991_s23  ;;  %v2388_v17 = vld [vmem:[%s3367_s1 + $0xb0] sm:$0x3f] }
0x2ad2   :  { %v2937_v19 = vpop.eup %2936 }
0x2ad3   :  { %v2067_v21 = vadd.f32 1.0, %v2937_v19 }
0x2ad5   :  { %v2068_v22 = vmul.f32 0.5, %v2067_v21 }
0x2ad7   :  { %v2070_v26 = vmul.f32 %v2068_v22, %v1980_v0 }
0x2b43   :  { %v2073_v23 = vpop.permute.xlu0 %2072 }
0x2b44   :  { %v2075_v25 = vmul.f32 %v2073_v23, %v2068_v22 }
0x2b46   :  { %2077 = vrot.lane.b32.xlu1 %v2075_v25, %s2992_s4  ;;  %v2530_v25 = vld [vmem:[%s3367_s1 + $0xb8] ss:$0 sm:$0xff] }
0x2bb8   :  { %v2078_v12 = vpop.permute.xlu1 %2077 }
0x2bb9   :  { %v2080_v29 = vadd.f32 %v2078_v12, %v2070_v26 }
0x2bbb   :  { %2938 = vtanh.f32 %v2080_v29 }
0x2bc5   :  { %v2939_v30 = vpop.eup %2938 }
0x2bc6   :  { %2083 = vrot.lane.b32.xlu0 %v2939_v30, %s2993_s5 }
0x2c38   :  { %v2084_v16 = vpop.permute.xlu0 %2083 }
0x2c39   :  { %v2086_v31 = vmul.f32 %v2084_v16, %v2068_v22 }
0x2c3b   :  { %2090 = vrot.lane.b32.xlu1 %v2086_v31, %s2994_s6 }
0x2cad   :  { %v2091_v20 = vpop.permute.xlu1 %2090 }
0x2cae   :  { %2753 = vmatmul.mubr.msk.f32.vlgmr.msra.gmra.mrb[20].mxu0 %vm20_vm1, %v2091_v20 }
0x2caf   :  { %2761 = vmatpush3.msk.msra.mxu0 %vm27_vm0, %v3260_v54  ;;  %2762 = vmatprep.mubr.msk.f32.mxu0 %vm2985_vm2, %v2986_v7 }
0x2d81   :  { %v2160_v33 = vpop.f32.mrb[20].mxu0 }
0x2d82   :  { %v2164_v34 = vadd.f32 %v2160_v33, %v2088_v32  ;;  %v2754_v24 = vpop.f32.mrb[21].mxu0 }
0x2d84   :  { %2940 = vtanh.f32 %v2164_v34  ;;  %v2165_v36 = vmul.f32 0.5, %v2164_v34 }
0x2d86   :  { %2942 = vtanh.f32 %v2165_v36 }
0x2d8e   :  { %v2941_v35 = vpop.eup %2940 }
0x2d8f   :  { %2172 = vrot.lane.b32.xlu0 %v2941_v35, %s2991_s23 }
0x2d90   :  { %v2943_v37 = vpop.eup %2942 }
0x2d91   :  { %v2167_v38 = vadd.f32 1.0, %v2943_v37 }
0x2d93   :  { %v2168_v39 = vmul.f32 0.5, %v2167_v38 }
0x2d95   :  { %v2170_v54 = vmul.f32 %v2168_v39, %v2080_v29 }
0x2e01   :  { %v2173_v40 = vpop.permute.xlu0 %2172 }
0x2e02   :  { %v2175_v41 = vmul.f32 %v2173_v40, %v2168_v39 }
0x2e04   :  { %2177 = vrot.lane.b32.xlu1 %v2175_v41, %s2992_s4 }
0x2e76   :  { %v2178_v42 = vpop.permute.xlu1 %2177 }
0x2e77   :  { %v2180_v43 = vadd.f32 %v2178_v42, %v2170_v54 }
0x2e79   :  { %2944 = vtanh.f32 %v2180_v43 }
0x2e83   :  { %v2945_v44 = vpop.eup %2944 }
0x2e84   :  { %2183 = vrot.lane.b32.xlu0 %v2945_v44, %s2993_s5 }
0x2ef6   :  { %v2184_v10 = vpop.permute.xlu0 %2183 }
0x2ef7   :  { %v2186_v13 = vmul.f32 %v2184_v10, %v2168_v39 }
0x2ef9   :  { %2190 = vrot.lane.b32.xlu1 %v2186_v13, %s2994_s6 }
0x2f6b   :  { %v2191_v45 = vpop.permute.xlu1 %2190 }
0x2f6c   :  { %2758 = vmatmul.mubr.msk.f32.vlgmr.msra.gmra.mrb[20].mxu1 %vm20_vm1, %v2191_v45 }
0x2f6d   :  { %2767 = vmatprep.mubr.msk.f32.mxu1 %vm2985_vm2, %v2986_v7  ;;  %2766 = vmatpush3.msk.msra.mxu1 %vm27_vm0, %v2388_v17 }
0x303f   :  { %v2260_v49 = vpop.f32.mrb[20].mxu1 }
0x3040   :  { %v2264_v50 = vadd.f32 %v2260_v49, %v2188_v46  ;;  %v2759_v51 = vpop.f32.mrb[21].mxu1 }
0x3042   :  { %2946 = vtanh.f32 %v2264_v50  ;;  %v2265_v52 = vmul.f32 0.5, %v2264_v50 }
0x3044   :  { %2948 = vtanh.f32 %v2265_v52 }
0x304c   :  { %v2947_v28 = vpop.eup %2946 }
0x304d   :  { %2272 = vrot.lane.b32.xlu0 %v2947_v28, %s2991_s23 }
0x304e   :  { %v2949_v3 = vpop.eup %2948 }
0x304f   :  { %v2267_v53 = vadd.f32 1.0, %v2949_v3 }
0x3051   :  { %v2268_v48 = vmul.f32 0.5, %v2267_v53 }
0x3053   :  { %v2270_v57 = vmul.f32 %v2268_v48, %v2180_v43 }
0x30bf   :  { %v2273_v55 = vpop.permute.xlu0 %2272 }
0x30c0   :  { %v2275_v56 = vmul.f32 %v2273_v55, %v2268_v48 }
0x30c2   :  { %2277 = vrot.lane.b32.xlu1 %v2275_v56, %s2992_s4 }
0x3134   :  { %v2278_v47 = vpop.permute.xlu1 %2277 }
0x3135   :  { %v2280_v7 = vadd.f32 %v2278_v47, %v2270_v57 }
0x3137   :  { %2950 = vtanh.f32 %v2280_v7 }
0x3141   :  { %v2951_v58 = vpop.eup %2950 }
0x3142   :  { %2283 = vrot.lane.b32.xlu0 %v2951_v58, %s2993_s5 }
0x31b4   :  { %v2284_v5 = vpop.permute.xlu0 %2283 }
0x31b5   :  { %v2286_v6 = vmul.f32 %v2284_v5, %v2268_v48 }
0x31b7   :  { %2290 = vrot.lane.b32.xlu1 %v2286_v6, %s2994_s6 }
0x3229   :  { %v2291_v27 = vpop.permute.xlu1 %2290 }
0x322a   :  { %2763 = vmatmul.mubr.msk.f32.vlgmr.msra.gmra.mrb[22].mxu0 %vm20_vm1, %v2291_v27 }
0x32fd   :  { %v2360_v60 = vpop.f32.mrb[22].mxu0 }
0x32fe   :  { %v2364_v61 = vadd.f32 %v2360_v60, %v2288_v59  ;;  %v2764_v62 = vpop.f32.mrb[23].mxu0 }
0x3300   :  { %2952 = vtanh.f32 %v2364_v61  ;;  %v2365_v0 = vmul.f32 0.5, %v2364_v61 }
0x3302   :  { %2954 = vtanh.f32 %v2365_v0 }
0x330a   :  { %v2953_v63 = vpop.eup %2952 }
0x330b   :  { %2372 = vrot.lane.b32.xlu0 %v2953_v63, %s2991_s23 }
0x330c   :  { %v2955_v1 = vpop.eup %2954 }
0x330d   :  { %v2367_v2 = vadd.f32 1.0, %v2955_v1 }
0x330f   :  { %v2368_v4 = vmul.f32 0.5, %v2367_v2 }
0x3311   :  { %v2370_v11 = vmul.f32 %v2368_v4, %v2280_v7 }
0x337d   :  { %v2373_v8 = vpop.permute.xlu0 %2372 }
0x337e   :  { %v2375_v9 = vmul.f32 %v2373_v8, %v2368_v4 }
0x3380   :  { %2377 = vrot.lane.b32.xlu1 %v2375_v9, %s2992_s4 }
0x33f2   :  { %v2378_v14 = vpop.permute.xlu1 %2377 }
0x33f3   :  { %v2380_v15 = vadd.f32 %v2378_v14, %v2370_v11 }
0x33f5   :  { %2956 = vtanh.f32 %v2380_v15 }
0x33ff   :  { %v2957_v18 = vpop.eup %2956 }
0x3400   :  { %2383 = vrot.lane.b32.xlu0 %v2957_v18, %s2993_s5 }
0x3472   :  { %v2384_v19 = vpop.permute.xlu0 %2383 }
0x3473   :  { %v2386_v21 = vmul.f32 %v2384_v19, %v2368_v4 }
0x3475   :  { %v2387_v22 = vmax.f32 %v2386_v21, 0.0 }
0x3477   :  { %2395 = vrot.lane.b32.xlu1 %v2387_v22, %s2994_s6 }
0x34e9   :  { %v2396_v23 = vpop.permute.xlu1 %2395 }
0x34ea   :  { %2768 = vmatmul.mubr.msk.f32.vlgmr.msra.gmra.mrb[22].mxu1 %vm20_vm1, %v2396_v23 }
0x35bd   :  { %v2468_v26 = vpop.f32.mrb[22].mxu1 }
0x35be   :  { %v2469_v12 = vadd.f32 %v2530_v25, %v2468_v26  ;;  %v2769_v29 = vpop.f32.mrb[23].mxu1 }
0x35c0   :  { %v2472_v30 = vmul.f32 0.5, %v2469_v12 }
0x35c2   :  { %2958 = vtanh.f32 %v2472_v30 }
0x35cc   :  { %v2959_v16 = vpop.eup %2958 }
0x35cd   :  { %v2474_v31 = vadd.f32 1.0, %v2959_v16 }
0x35cf   :  { %v2475_v20 = vmul.f32 0.5, %v2474_v31 }
0x35d1   :  { %2477 = vst.msk [vmem:[#allocation4] sm:$0x3] %vm2476_vm10, %v2475_v20 }
0x35d2   :  { %2971 = shalt.err (!%p2968_p4)
}
0x35d3   :  { %s2972_s15 = scalar_lea.hbm %s3368_s2, 32 }
0x35d4   :  { %p2973_p5 = scmp.ne.s32.totalorder %s3368_s2, %s2972_s15  ;;  %p2976_p6 = scmp.lt.u32.totalorder %s2972_s15, %s3368_s2 }
0x35d6   :  { %p2978_p7 = pnand %p2976_p6, %p2973_p5 }
0x35d8   :  { %2981 = shalt.err (!%p2978_p7)
}
0x35d9   :  { %2487 = dma.vmem_to_hbm [thread:$0]  %s2485_s12, 32, %s3368_s2, [#allocation5]  }
0x35da   :  { %2982 = dma.done.wait [#allocation5], 32  }
0x35db   :  { %2983 = vsyncadd [#allocation5], 4294967264 }
0x35dc   :  { %2491 = vsyncpa [#allocation5], 1 }

</bundles_post_ra>
